<compile_context>
chip_gen: v6e
topology: v6e:2x2x1
jax: 0.10.0
libtpu: 0.0.40
codegen_flags: <defaults>
</compile_context>

<pallas_src>
import functools

import jax
import jax.numpy as jnp
import numpy as np
from jax.experimental import pallas as pl
from jax.experimental.pallas import tpu as pltpu

_LANE = 128
_NEG_BIG = -1e30


def _round_up(v, m):
    return (v + m - 1) // m * m


def _pad2(a, rows, cols):
    """Zero-pad the last two dims of `a` up to (rows, cols)."""
    r, c = a.shape[-2], a.shape[-1]
    pad = [(0, 0)] * (a.ndim - 2) + [(0, rows - r), (0, cols - c)]
    return jnp.pad(a, pad)


def _model_kernel(num_layers, act, conv, n_pad, pad_cols,
                  x_ref, coladd_ref, encw_ref, encb_ref, decw_ref, decb_ref,
                  a_ref, w1_ref, *rest):
    if conv == 'KP':
        w2_ref = None
        y_ref, hout_ref, h_scr = rest
    else:
        w2_ref, y_ref, hout_ref, h_scr = rest

    f32 = jnp.float32
    bf16 = jnp.bfloat16
    l = pl.program_id(0)

    # ---- encoder (first grid step only): h = relu(x @ We + be) ----
    @pl.when(l == 0)
    def _():
        h0 = jnp.dot(x_ref[...].astype(bf16), encw_ref[...],
                     preferred_element_type=f32) + encb_ref[...]
        h_scr[...] = jnp.maximum(h0, 0.0)

    h = h_scr[...]
    a = a_ref[...]                       # (a_rows, n_pad) bf16, pre-masked

    if conv == 'softmax_SKP':
        a_f = a.astype(f32)
        if pad_cols:
            # exclude zero-padded columns from the softmax
            a_f = a_f + coladd_ref[...]
        m = jnp.max(a_f, axis=-1, keepdims=True)
        e = jnp.exp(a_f - m)
        s = jnp.sum(e, axis=-1, keepdims=True)
        a_mm = (e / s).astype(bf16)      # exact divide: off MXU critical path
    else:
        a_mm = a

    # one MXU pass for both adjacencies: (2n, n) @ (n, d)   (or (n,n)@(n,d) KP)
    p = jnp.dot(a_mm, h.astype(bf16), preferred_element_type=f32)

    if conv == 'KP':
        h_new = jnp.dot(p.astype(bf16), w1_ref[...], preferred_element_type=f32)
    else:
        # two accumulated dots; 0.5 is folded into w1/w2 in the wrapper
        h_new = (jnp.dot(p[:n_pad].astype(bf16), w1_ref[...],
                         preferred_element_type=f32)
                 + jnp.dot(p[n_pad:].astype(bf16), w2_ref[...],
                           preferred_element_type=f32))

    if act:
        h_new = jnp.maximum(h_new, 0.0)

    h_scr[...] = h_new

    # ---- decoder (last grid step only): y = h @ Wd + bd ----
    @pl.when(l == num_layers - 1)
    def _():
        hout_ref[...] = h_new
        y_ref[...] = (jnp.dot(h_new.astype(bf16), decw_ref[...],
                              preferred_element_type=f32) + decb_ref[...])


def model_forward(x, mask, params, *, num_layers, act, conv):
    if conv not in ('softmax_SKP', 'KP', 'SKP'):
        raise ValueError('Error!')
    if num_layers < 1:
        raise ValueError('num_layers must be >= 1')

    n, d = x.shape
    out_dim = params['dec_w'].shape[-1]

    n_pad = _round_up(n, _LANE)
    d_pad = _round_up(d, _LANE)
    o_pad = _round_up(out_dim, _LANE)

    f32 = jnp.float32
    bf16 = jnp.bfloat16

    # ---- wrapper-side (one-time) padding, masking, weight folding ----
    x_p = _pad2(x, n_pad, d_pad).astype(f32)
    enc_w = _pad2(params['enc_w'], d_pad, d_pad).astype(bf16)
    enc_b = _pad2(params['enc_b'], 1, d_pad).astype(f32)
    dec_w = _pad2(params['dec_w'], d_pad, o_pad).astype(bf16)
    dec_b = _pad2(params['dec_b'], 1, o_pad).astype(f32)

    mask_f = mask.astype(f32)
    a1m = params['A1'] * mask_f[None]                       # (L, n, n)
    if conv == 'KP':
        a_cat = _pad2(a1m, n_pad, n_pad).astype(bf16)       # (L, n_pad, n_pad)
        w1 = _pad2(params['W'], d_pad, d_pad).astype(bf16)
        w2 = None
        a_rows = n_pad
    else:
        a2m = params['A2'] * mask_f[None]
        a_cat = jnp.concatenate([_pad2(a1m, n_pad, n_pad),
                                 _pad2(a2m, n_pad, n_pad)],
                                axis=1).astype(bf16)        # (L, 2*n_pad, n_pad)
        w1 = (0.5 * _pad2(params['W'], d_pad, d_pad)).astype(bf16)
        w2 = (0.5 * _pad2(params['W2'], d_pad, d_pad)).astype(bf16)
        a_rows = 2 * n_pad

    # additive column mask: padded columns get ~zero softmax weight
    col_add = jnp.where(jnp.arange(n_pad)[None, :] < n, 0.0, _NEG_BIG).astype(f32)
    pad_cols = n_pad > n

    # ---- specs ----
    def const2(shape):
        return pl.BlockSpec(shape, lambda l: (0, 0))

    def layer3(rows, cols):
        return pl.BlockSpec((None, rows, cols), lambda l: (l, 0, 0))

    operands = [x_p, col_add, enc_w, enc_b, dec_w, dec_b, a_cat, w1]
    in_specs = [const2((n_pad, d_pad)),
                const2((1, n_pad)),
                const2((d_pad, d_pad)),
                const2((1, d_pad)),
                const2((d_pad, o_pad)),
                const2((1, o_pad)),
                layer3(a_rows, n_pad),
                layer3(d_pad, d_pad)]
    if w2 is not None:
        operands.append(w2)
        in_specs.append(layer3(d_pad, d_pad))

    out_shape = (jax.ShapeDtypeStruct((n_pad, o_pad), f32),
                 jax.ShapeDtypeStruct((n_pad, d_pad), f32))
    out_specs = (pl.BlockSpec((n_pad, o_pad), lambda l: (0, 0)),
                 pl.BlockSpec((n_pad, d_pad), lambda l: (0, 0)))
    scratch_shapes = [pltpu.VMEM((n_pad, d_pad), f32)]

    # ---- VMEM budget: resident state + 2x per-layer block (double buffer) ----
    def nbytes(a):
        return int(np.prod(a.shape)) * a.dtype.itemsize

    resident = sum(nbytes(a) for a in (x_p, col_add, enc_w, enc_b, dec_w, dec_b))
    resident += (n_pad * o_pad + 2 * n_pad * d_pad) * 4      # y + h_out + h scratch
    per_layer = a_rows * n_pad * 2 + d_pad * d_pad * 2 * (1 if w2 is None else 2)
    vmem_limit = int(min(max(2 * resident + 2 * per_layer + (4 << 20), 16 << 20),
                         56 << 20))

    kernel = functools.partial(_model_kernel, num_layers, act, conv,
                               n_pad, pad_cols)

    y_p, h_p = pl.pallas_call(
        kernel,
        out_shape=out_shape,
        grid_spec=pltpu.PrefetchScalarGridSpec(
            num_scalar_prefetch=0,
            grid=(num_layers,),
            in_specs=in_specs,
            out_specs=out_specs,
            scratch_shapes=scratch_shapes),
        compiler_params=pltpu.CompilerParams(
            dimension_semantics=("arbitrary",),
            vmem_limit_bytes=vmem_limit),
    )(*operands)

    return y_p[:n, :out_dim], h_p[:n, :d]


def _reference_forward(x, mask, params, *, num_layers, act, conv):
    """Pure-JAX f32 reference mirroring the PyTorch forward."""
    h = jax.nn.relu(x @ params['enc_w'] + params['enc_b'])
    for l in range(num_layers):
        a1 = params['A1'][l] * mask
        a2 = params['A2'][l] * mask
        if conv == 'softmax_SKP':
            a1 = jax.nn.softmax(a1, axis=-1)
            a2 = jax.nn.softmax(a2, axis=-1)
            h = 0.5 * (a1 @ h @ params['W'][l]) + 0.5 * (a2 @ h @ params['W2'][l])
        elif conv == 'KP':
            h = a1 @ h @ params['W'][l]
        else:  # 'SKP'
            h = 0.5 * (a1 @ h @ params['W'][l]) + 0.5 * (a2 @ h @ params['W2'][l])
        if act:
            h = jax.nn.relu(h)
    y = h @ params['dec_w'] + params['dec_b']
    return y, h


def init_params(key, n, d, out_dim, num_layers):
    ks = jax.random.split(key, 10)
    # adjacency mask: random 0/1 with guaranteed self-loops (so degree > 0)
    mask = (jax.random.uniform(ks[0], (n, n)) > 0.5).astype(jnp.float32)
    mask = jnp.maximum(mask, jnp.eye(n, dtype=jnp.float32))
    degrees = 1.0 / jnp.sum(mask, axis=1, keepdims=True)          # (n, 1)

    params = {
        # Linear weights stored transposed: forward computes x @ W + b.
        'enc_w': jax.random.normal(ks[1], (d, d)) * 0.05,
        'enc_b': jax.random.normal(ks[2], (1, d)) * 0.05,
        'A1': jax.random.normal(ks[3], (num_layers, n, n)) * 0.05 + degrees[None],
        'A2': jax.random.normal(ks[4], (num_layers, n, n)) * 0.05 + degrees[None],
        'W': jax.random.normal(ks[5], (num_layers, d, d)) * 0.05 + 1.0 / d,
        'W2': jax.random.normal(ks[6], (num_layers, d, d)) * 0.05 + 1.0 / d,
        'dec_w': jax.random.normal(ks[7], (d, out_dim)) * 0.05,
        'dec_b': jax.random.normal(ks[8], (1, out_dim)) * 0.05,
    }
    params = jax.tree_util.tree_map(lambda a: a.astype(jnp.float32), params)
    return params, mask, ks[9]


if __name__ == "__main__":
    n, d, out_dim, num_layers = 8, 32, 8, 2   # out_dim stands in for y.shape[-1]
    act = True

    key = jax.random.PRNGKey(0)
    params, mask, xkey = init_params(key, n, d, out_dim, num_layers)
    x = jax.random.normal(xkey, (n, d), dtype=jnp.float32)

    for conv in ('softmax_SKP', 'KP', 'SKP'):
        y, h = model_forward(x, mask, params,
                             num_layers=num_layers, act=act, conv=conv)
        jax.block_until_ready((y, h))

        y_ref, h_ref = _reference_forward(x, mask, params,
                                          num_layers=num_layers, act=act,
                                          conv=conv)
        # bf16 MXU inputs (and bf16-stored A) -> slightly relaxed tolerance
        np.testing.assert_allclose(np.asarray(y), np.asarray(y_ref),
                                   rtol=3e-2, atol=1e-2)
        np.testing.assert_allclose(np.asarray(h), np.asarray(h_ref),
                                   rtol=3e-2, atol=1e-2)

    print("KERNEL_OK")
</pallas_src>

<mosaic_0001>
module attributes {stable_mosaic.version = 11 : i64} {
  func.func @_model_kernel(%arg0: i32, %arg1: memref<128x128xf32, #tpu.memory_space<vmem>>, %arg2: memref<1x128xf32, #tpu.memory_space<vmem>>, %arg3: memref<128x128xbf16, #tpu.memory_space<vmem>>, %arg4: memref<1x128xf32, #tpu.memory_space<vmem>>, %arg5: memref<128x128xbf16, #tpu.memory_space<vmem>>, %arg6: memref<1x128xf32, #tpu.memory_space<vmem>>, %arg7: memref<1x256x128xbf16, #tpu.memory_space<vmem>>, %arg8: memref<1x128x128xbf16, #tpu.memory_space<vmem>>, %arg9: memref<1x128x128xbf16, #tpu.memory_space<vmem>>, %arg10: memref<128x128xf32, #tpu.memory_space<vmem>>, %arg11: memref<128x128xf32, #tpu.memory_space<vmem>>, %arg12: memref<128x128xf32, #tpu.memory_space<vmem>>) attributes {dimension_semantics = [#tpu.dimension_semantics<arbitrary>], iteration_bounds = array<i64: 2>, scalar_prefetch = 0 : i64, scratch_operands = 1 : i64, tpu.core_type = #tpu.core_type<tc>, window_params = [{pipeline_mode = #tpu.pipeline_mode<synchronous>, transform_indices = @transform_0, window_bounds = array<i64: 128, 128>}, {pipeline_mode = #tpu.pipeline_mode<synchronous>, transform_indices = @transform_1, window_bounds = array<i64: 1, 128>}, {pipeline_mode = #tpu.pipeline_mode<synchronous>, transform_indices = @transform_2, window_bounds = array<i64: 128, 128>}, {pipeline_mode = #tpu.pipeline_mode<synchronous>, transform_indices = @transform_3, window_bounds = array<i64: 1, 128>}, {pipeline_mode = #tpu.pipeline_mode<synchronous>, transform_indices = @transform_4, window_bounds = array<i64: 128, 128>}, {pipeline_mode = #tpu.pipeline_mode<synchronous>, transform_indices = @transform_5, window_bounds = array<i64: 1, 128>}, {transform_indices = @transform_6, window_bounds = array<i64: 1, 256, 128>}, {transform_indices = @transform_7, window_bounds = array<i64: 1, 128, 128>}, {transform_indices = @transform_8, window_bounds = array<i64: 1, 128, 128>}, {pipeline_mode = #tpu.pipeline_mode<synchronous>, transform_indices = @transform_9, window_bounds = array<i64: 128, 128>}, {pipeline_mode = #tpu.pipeline_mode<synchronous>, transform_indices = @transform_10, window_bounds = array<i64: 128, 128>}]} {
    %c0_i32 = arith.constant 0 : i32
    %0 = arith.cmpi eq, %arg0, %c0_i32 : i32
    %1 = arith.extui %0 : i1 to i32
    %c0_i32_0 = arith.constant 0 : i32
    %2 = arith.cmpi ne, %1, %c0_i32_0 : i32
    scf.if %2 {
      %c0_21 = arith.constant 0 : index
      %c0_22 = arith.constant 0 : index
      %39 = vector.load %arg1[%c0_21, %c0_22] : memref<128x128xf32, #tpu.memory_space<vmem>>, vector<128x128xf32>
      %40 = arith.truncf %39 : vector<128x128xf32> to vector<128x128xbf16>
      %c0_23 = arith.constant 0 : index
      %c0_24 = arith.constant 0 : index
      %41 = vector.load %arg3[%c0_23, %c0_24] : memref<128x128xbf16, #tpu.memory_space<vmem>>, vector<128x128xbf16>
      %cst_25 = arith.constant dense<0.000000e+00> : vector<128x128xf32>
      %42 = tpu.matmul %40, %41, %cst_25 {dimension_numbers = #tpu.dot_dimension_numbers<[1], [0], [0], [1], [0, 0, 1, 1], [], []>} : vector<128x128xbf16>, vector<128x128xbf16>, vector<128x128xf32> -> vector<128x128xf32>
      %c0_26 = arith.constant 0 : index
      %c0_27 = arith.constant 0 : index
      %43 = vector.load %arg4[%c0_26, %c0_27] : memref<1x128xf32, #tpu.memory_space<vmem>>, vector<1x128xf32>
      %44 = vector.broadcast %43 : vector<1x128xf32> to vector<128x128xf32>
      %45 = arith.addf %42, %44 : vector<128x128xf32>
      %cst_28 = arith.constant 0.000000e+00 : f32
      %46 = vector.broadcast %cst_28 : f32 to vector<128x128xf32>
      %47 = arith.maximumf %45, %46 : vector<128x128xf32>
      %c0_29 = arith.constant 0 : index
      %c0_30 = arith.constant 0 : index
      %48 = vector.load %arg12[%c0_29, %c0_30] : memref<128x128xf32, #tpu.memory_space<vmem>>, vector<128x128xf32>
      tpu.vector_store %arg12[%c0_29, %c0_30], %47 {strides = array<i32>} : memref<128x128xf32, #tpu.memory_space<vmem>>, vector<128x128xf32>,
    } else {
    }
    %c0 = arith.constant 0 : index
    %c0_1 = arith.constant 0 : index
    %3 = vector.load %arg12[%c0, %c0_1] : memref<128x128xf32, #tpu.memory_space<vmem>>, vector<128x128xf32>
    %c0_2 = arith.constant 0 : index
    %c0_3 = arith.constant 0 : index
    %c0_4 = arith.constant 0 : index
    %4 = vector.load %arg7[%c0_2, %c0_3, %c0_4] : memref<1x256x128xbf16, #tpu.memory_space<vmem>>, vector<1x256x128xbf16>
    %5 = vector.shape_cast %4 : vector<1x256x128xbf16> to vector<256x128xbf16>
    %6 = arith.extf %5 : vector<256x128xbf16> to vector<256x128xf32>
    %c0_5 = arith.constant 0 : index
    %c0_6 = arith.constant 0 : index
    %7 = vector.load %arg2[%c0_5, %c0_6] : memref<1x128xf32, #tpu.memory_space<vmem>>, vector<1x128xf32>
    %8 = vector.broadcast %7 : vector<1x128xf32> to vector<256x128xf32>
    %9 = arith.addf %6, %8 : vector<256x128xf32>
    %cst = arith.constant dense<0xFF800000> : vector<256xf32>
    %10 = vector.multi_reduction <maximumf>, %9, %cst [1] : vector<256x128xf32> to vector<256xf32>
    %11 = vector.shape_cast %10 : vector<256xf32> to vector<256x1xf32>
    %12 = vector.broadcast %11 : vector<256x1xf32> to vector<256x128xf32>
    %13 = arith.subf %9, %12 : vector<256x128xf32>
    %14 = math.exp %13 : vector<256x128xf32>
    %cst_7 = arith.constant dense<0.000000e+00> : vector<256xf32>
    %15 = vector.multi_reduction <add>, %14, %cst_7 [1] : vector<256x128xf32> to vector<256xf32>
    %16 = vector.shape_cast %15 : vector<256xf32> to vector<256x1xf32>
    %17 = vector.broadcast %16 : vector<256x1xf32> to vector<256x128xf32>
    %18 = arith.divf %14, %17 : vector<256x128xf32>
    %19 = arith.truncf %18 : vector<256x128xf32> to vector<256x128xbf16>
    %20 = arith.truncf %3 : vector<128x128xf32> to vector<128x128xbf16>
    %cst_8 = arith.constant dense<0.000000e+00> : vector<256x128xf32>
    %21 = tpu.matmul %19, %20, %cst_8 {dimension_numbers = #tpu.dot_dimension_numbers<[1], [0], [0], [1], [0, 0, 1, 1], [], []>} : vector<256x128xbf16>, vector<128x128xbf16>, vector<256x128xf32> -> vector<256x128xf32>
    %22 = vector.extract_strided_slice %21 {offsets = [0, 0], sizes = [128, 128], strides = [1, 1]} : vector<256x128xf32> to vector<128x128xf32>
    %23 = arith.truncf %22 : vector<128x128xf32> to vector<128x128xbf16>
    %c0_9 = arith.constant 0 : index
    %c0_10 = arith.constant 0 : index
    %c0_11 = arith.constant 0 : index
    %24 = vector.load %arg8[%c0_9, %c0_10, %c0_11] : memref<1x128x128xbf16, #tpu.memory_space<vmem>>, vector<1x128x128xbf16>
    %25 = vector.shape_cast %24 : vector<1x128x128xbf16> to vector<128x128xbf16>
    %cst_12 = arith.constant dense<0.000000e+00> : vector<128x128xf32>
    %26 = tpu.matmul %23, %25, %cst_12 {dimension_numbers = #tpu.dot_dimension_numbers<[1], [0], [0], [1], [0, 0, 1, 1], [], []>} : vector<128x128xbf16>, vector<128x128xbf16>, vector<128x128xf32> -> vector<128x128xf32>
    %27 = vector.extract_strided_slice %21 {offsets = [128, 0], sizes = [128, 128], strides = [1, 1]} : vector<256x128xf32> to vector<128x128xf32>
    %28 = arith.truncf %27 : vector<128x128xf32> to vector<128x128xbf16>
    %c0_13 = arith.constant 0 : index
    %c0_14 = arith.constant 0 : index
    %c0_15 = arith.constant 0 : index
    %29 = vector.load %arg9[%c0_13, %c0_14, %c0_15] : memref<1x128x128xbf16, #tpu.memory_space<vmem>>, vector<1x128x128xbf16>
    %30 = vector.shape_cast %29 : vector<1x128x128xbf16> to vector<128x128xbf16>
    %cst_16 = arith.constant dense<0.000000e+00> : vector<128x128xf32>
    %31 = tpu.matmul %28, %30, %cst_16 {dimension_numbers = #tpu.dot_dimension_numbers<[1], [0], [0], [1], [0, 0, 1, 1], [], []>} : vector<128x128xbf16>, vector<128x128xbf16>, vector<128x128xf32> -> vector<128x128xf32>
    %32 = arith.addf %26, %31 : vector<128x128xf32>
    %cst_17 = arith.constant 0.000000e+00 : f32
    %33 = vector.broadcast %cst_17 : f32 to vector<128x128xf32>
    %34 = arith.maximumf %32, %33 : vector<128x128xf32>
    %c0_18 = arith.constant 0 : index
    %c0_19 = arith.constant 0 : index
    %35 = vector.load %arg12[%c0_18, %c0_19] : memref<128x128xf32, #tpu.memory_space<vmem>>, vector<128x128xf32>
    tpu.vector_store %arg12[%c0_18, %c0_19], %34 {strides = array<i32>} : memref<128x128xf32, #tpu.memory_space<vmem>>, vector<128x128xf32>,
    %c1_i32 = arith.constant 1 : i32
    %36 = arith.cmpi eq, %arg0, %c1_i32 : i32
    %37 = arith.extui %36 : i1 to i32
    %c0_i32_20 = arith.constant 0 : i32
    %38 = arith.cmpi ne, %37, %c0_i32_20 : i32
    scf.if %38 {
      %c0_21 = arith.constant 0 : index
      %c0_22 = arith.constant 0 : index
      %39 = vector.load %arg11[%c0_21, %c0_22] : memref<128x128xf32, #tpu.memory_space<vmem>>, vector<128x128xf32>
      tpu.vector_store %arg11[%c0_21, %c0_22], %34 {strides = array<i32>} : memref<128x128xf32, #tpu.memory_space<vmem>>, vector<128x128xf32>,
      %40 = arith.truncf %34 : vector<128x128xf32> to vector<128x128xbf16>
      %c0_23 = arith.constant 0 : index
      %c0_24 = arith.constant 0 : index
      %41 = vector.load %arg5[%c0_23, %c0_24] : memref<128x128xbf16, #tpu.memory_space<vmem>>, vector<128x128xbf16>
      %cst_25 = arith.constant dense<0.000000e+00> : vector<128x128xf32>
      %42 = tpu.matmul %40, %41, %cst_25 {dimension_numbers = #tpu.dot_dimension_numbers<[1], [0], [0], [1], [0, 0, 1, 1], [], []>} : vector<128x128xbf16>, vector<128x128xbf16>, vector<128x128xf32> -> vector<128x128xf32>
      %c0_26 = arith.constant 0 : index
      %c0_27 = arith.constant 0 : index
      %43 = vector.load %arg6[%c0_26, %c0_27] : memref<1x128xf32, #tpu.memory_space<vmem>>, vector<1x128xf32>
      %44 = vector.broadcast %43 : vector<1x128xf32> to vector<128x128xf32>
      %45 = arith.addf %42, %44 : vector<128x128xf32>
      %c0_28 = arith.constant 0 : index
      %c0_29 = arith.constant 0 : index
      %46 = vector.load %arg10[%c0_28, %c0_29] : memref<128x128xf32, #tpu.memory_space<vmem>>, vector<128x128xf32>
      tpu.vector_store %arg10[%c0_28, %c0_29], %45 {strides = array<i32>} : memref<128x128xf32, #tpu.memory_space<vmem>>, vector<128x128xf32>,
    } else {
    }
    return
  }
  func.func @transform_0(%arg0: i32) -> (i32, i32) {
    %c0_i32 = arith.constant 0 : i32
    %c0_i32_0 = arith.constant 0 : i32
    %c0_i32_1 = arith.constant 0 : i32
    return %c0_i32, %c0_i32_0 : i32, i32
  }
  func.func @transform_1(%arg0: i32) -> (i32, i32) {
    %c0_i32 = arith.constant 0 : i32
    %c0_i32_0 = arith.constant 0 : i32
    %c0_i32_1 = arith.constant 0 : i32
    return %c0_i32, %c0_i32_0 : i32, i32
  }
  func.func @transform_2(%arg0: i32) -> (i32, i32) {
    %c0_i32 = arith.constant 0 : i32
    %c0_i32_0 = arith.constant 0 : i32
    %c0_i32_1 = arith.constant 0 : i32
    return %c0_i32, %c0_i32_0 : i32, i32
  }
  func.func @transform_3(%arg0: i32) -> (i32, i32) {
    %c0_i32 = arith.constant 0 : i32
    %c0_i32_0 = arith.constant 0 : i32
    %c0_i32_1 = arith.constant 0 : i32
    return %c0_i32, %c0_i32_0 : i32, i32
  }
  func.func @transform_4(%arg0: i32) -> (i32, i32) {
    %c0_i32 = arith.constant 0 : i32
    %c0_i32_0 = arith.constant 0 : i32
    %c0_i32_1 = arith.constant 0 : i32
    return %c0_i32, %c0_i32_0 : i32, i32
  }
  func.func @transform_5(%arg0: i32) -> (i32, i32) {
    %c0_i32 = arith.constant 0 : i32
    %c0_i32_0 = arith.constant 0 : i32
    %c0_i32_1 = arith.constant 0 : i32
    return %c0_i32, %c0_i32_0 : i32, i32
  }
  func.func @transform_6(%arg0: i32) -> (i32, i32, i32) {
    %c0_i32 = arith.constant 0 : i32
    %c0_i32_0 = arith.constant 0 : i32
    %c0_i32_1 = arith.constant 0 : i32
    return %arg0, %c0_i32, %c0_i32_0 : i32, i32, i32
  }
  func.func @transform_7(%arg0: i32) -> (i32, i32, i32) {
    %c0_i32 = arith.constant 0 : i32
    %c0_i32_0 = arith.constant 0 : i32
    %c0_i32_1 = arith.constant 0 : i32
    return %arg0, %c0_i32, %c0_i32_0 : i32, i32, i32
  }
  func.func @transform_8(%arg0: i32) -> (i32, i32, i32) {
    %c0_i32 = arith.constant 0 : i32
    %c0_i32_0 = arith.constant 0 : i32
    %c0_i32_1 = arith.constant 0 : i32
    return %arg0, %c0_i32, %c0_i32_0 : i32, i32, i32
  }
  func.func @transform_9(%arg0: i32) -> (i32, i32) {
    %c0_i32 = arith.constant 0 : i32
    %c0_i32_0 = arith.constant 0 : i32
    %c0_i32_1 = arith.constant 0 : i32
    return %c0_i32, %c0_i32_0 : i32, i32
  }
  func.func @transform_10(%arg0: i32) -> (i32, i32) {
    %c0_i32 = arith.constant 0 : i32
    %c0_i32_0 = arith.constant 0 : i32
    %c0_i32_1 = arith.constant 0 : i32
    return %c0_i32, %c0_i32_0 : i32, i32
  }
}

</mosaic_0001>

<bundles_post_ra>
// kernel: tpu_custom_call.1
= control target key start
LH: loop header
LB: loop body
LE: loop exit
PB: predicated region body
PF: predicated region fallthrough
CT: control target
= control target key end

     0   :  { %s3825_s0 = inlined_call_operand.hbm [shape: f32[128,128], index: 0, kind: input, shape index: {}]   ;;  %s3826_s1 = inlined_call_operand.vmem [shape: f32[1,128], index: 1, kind: input, shape index: {}]   ;;  %s3827_s2 = inlined_call_operand.hbm [shape: bf16[128,128], index: 2, kind: input, shape index: {}]   ;;  %s3828_s3 = inlined_call_operand.vmem [shape: f32[1,128], index: 3, kind: input, shape index: {}]   ;;  %s3829_s4 = inlined_call_operand.hbm [shape: bf16[128,128], index: 4, kind: input, shape index: {}]   ;;  %s3830_s5 = inlined_call_operand.vmem [shape: f32[1,128], index: 5, kind: input, shape index: {}]   ;;  %s3831_s6 = inlined_call_operand.hbm [shape: bf16[2,256,128], index: 6, kind: input, shape index: {}]   ;;  %s3832_s7 = inlined_call_operand.hbm [shape: bf16[2,128,128], index: 7, kind: input, shape index: {}]   ;;  %s3833_s8 = inlined_call_operand.hbm [shape: bf16[2,128,128], index: 8, kind: input, shape index: {}]   ;;  %s3834_s9 = inlined_call_operand.hbm [shape: f32[128,128], index: 9, kind: output, shape index: {0}]   ;;  %s3835_s10 = inlined_call_operand.hbm [shape: f32[128,128], index: 10, kind: output, shape index: {1}]  }
   0x1   :  { %3851 = sst [smem:[#allocation26_spill]] %s3834_s9 }
   0x2   :  { %3852 = sst [smem:[#allocation27_spill]] %s3835_s10 }
   0x3   :  { %16 = vsyncpa [#allocation4], 0 }
   0x4   :  { %17 = vsyncpa [#allocation7], 0 }
   0x5   :  { %18 = vsyncpa [#allocation10], 0 }
   0x6   :  { %20 = vsyncpa [#allocation10 + $0x1], 0 }
   0x7   :  { %21 = vsyncpa [#allocation13], 0 }
   0x8   :  { %23 = vsyncpa [#allocation13 + $0x1], 0 }
   0x9   :  { %24 = vsyncpa [#allocation5], 0 }
   0xa   :  { %25 = vsyncpa [#allocation16], 0  ;;  %s3084_s13 = smov 0   ;;  %s3086_s14 = smov 0  }
   0xb   :  { %s3088_s15 = smov 0   ;;  %s3090_s16 = smov 0  }
   0xc LB: > { %3853 = sst [smem:[#allocation23_spill]] %s3009_s15  ;;  %s3103_s17 = sadd.s32 4294967295, %s3013_s16   ;;  %s3013_s16 = sphi %s3090_s16, %s3878_s16   ;;  %s3009_s15 = sphi %s3088_s15, %s3880_s15   ;;  %s3005_s14 = sphi %s3086_s14, %s3882_s14   ;;  %s3001_s13 = sphi %s3084_s13, %s3881_s13  }
   0xd   : > { %s3106_s18 = sadd.s32 1, %s3013_s16   ;;  %s164_s20 = sadd.s32 1, %s3009_s15 }
   0xe   : > { %3854 = sst [smem:[#allocation24_spill]] %s3106_s18  ;;  %s161_s19 = ssub.s32 %s3013_s16, %s3106_s18 }
   0xf   : > { %p162_p0 = scmp.eq.s32.totalorder %s161_s19, 0  ;;  %p171_p1 = scmp.ne.s32.totalorder %s3009_s15, %s3005_s14 }
  0x10   : > { %p172_p2 = scmp.eq.s32.totalorder %s3013_s16, 0  ;;  %p177_p3 = scmp.ne.s32.totalorder %s3005_s14, %s3001_s13 }
  0x11   : > { %s3116_s21 = scalar_select %p162_p0, %s3009_s15, %s164_s20  }
  0x12   : > { %p3118_p4 = por %p172_p2, %p171_p1  ;;  %p3839_p5 = scmp.eq.s32.totalorder %s3103_s17, 0 }
  0x13   : > { %3855 = sst [smem:[#allocation25_spill]] %s3116_s21  ;;  %p2047_p6 = scmp.ge.s32.totalorder %s3013_s16, 1 }
  0x14   : > { %p282_p7 = scmp.lt.s32.totalorder %s3013_s16, 3  ;;  %p3127_p8 = por %p3839_p5, %p177_p3 }
  0x15   : > { %s3015_s25 = smov [#allocation6]   ;;  %p2538_p13 = scmp.lt.s32.totalorder %s3013_s16, 2 }
  0x16   : > { %s3857_s23 = scalar_select %p3127_p8, 1, 0 }
  0x17   : > { %p3132_p10 = pnand %p2047_p6, %p282_p7  ;;  %s310_s26 = sshll.u32 %s3015_s25, 4  ;;  %s311_s26 = int_to_ptr.vmem [resolvable:$true] %s310_s26 }
  0x18   : > { %s343_s28 = sand.u32 1, %s3013_s16   ;;  %s3147_s29 = sand.u32 1, %s3009_s15  }
  0x19   : > { %s3858_s24 = scalar_select %p3132_p10, 1, 0 }
  0x1a   : > { %p2515_p11 = pneg %p3132_p10  ;;  %s2760_s30 = scalar_lea.vmem %s311_s26, 1024 }
  0x1b   : > { %p2761_p1 = scmp.ne.s32.totalorder %s311_s26, %s2760_s30  ;;  %p2768_p6 = scmp.lt.s32.totalorder %s311_s26, %s311_s26 }
  0x1c   : > { %p3140_p12 = pnand %p2515_p11, %p3839_p5  ;;  %p2769_p7 = scmp.lt.s32.totalorder %s2760_s30, %s2760_s30 }
  0x1e   : > { %s3859_s27 = scalar_select %p3140_p12, 1, 0 }
  0x1f   : > { %p3842_p0 = pneg %p3140_p12  ;;  %p2770_p11 = por %p2769_p7, %p2768_p6 }
  0x21   : > { %p2763_p2 = pnand %p2761_p1, %p3842_p0 }
  0x23   : > { %p2764_p3 = pneg %p2763_p2 }
  0x25   : > { %p2771_p9 = pnand %p2770_p11, %p2764_p3 }
  0x27   : > { %2774 = shalt.err (!%p2771_p9)
}
  0x28   : > { %s3840_s11 = smov 64   ;;  %s3849_s12 = smov 4  }
  0x29   : > { %2521 = dma.hbm_to_vmem [thread:$0]  (!%p3140_p12), %s3827_s2, 1024, %s311_s26, [#allocation7], %s3840_s11, %s3840_s11, %s3849_s12  }
  0x2a   : > { %s2052_s20 = sshll.u32 %s3147_s29, 7  ;;  %s2111_s25 = sshll.u32 %s3013_s16, 11 }
  0x2b   : > { %s3167_s15 = scalar_lea.hbm %s3831_s6, %s2111_s25  ;;  %s347_s18 = scalar_lea.vmem [#allocation9], %s2052_s20 }
  0x2c   : > { %s354_s10 = sshll.u32 %s347_s18, 4  ;;  %p3173_p9 = pnand %p2538_p13, %p3118_p4  ;;  %s3177_s10 = int_to_ptr.vmem [resolvable:$true] %s354_s10 }
  0x2d   : > { %s3018_s26 = smov [#allocation3]   ;;  %s3181_s21 = scalar_lea.sflag [#allocation10], %s343_s28 }
  0x2e   : > { %s3179_s13 = sshll.u32 %s3018_s26, 4  ;;  %s2775_s19 = scalar_lea.hbm %s3167_s15, 2048  ;;  %s295_s13 = int_to_ptr.vmem [resolvable:$true] %s3179_s13 }
  0x2f   : > { %p2776_p1 = scmp.ne.s32.totalorder %s3167_s15, %s2775_s19  ;;  %p3187_p2 = pneg %p3173_p9 }
  0x30   : > { %s2780_s25 = scalar_lea.hbm %s3831_s6, 4096  ;;  %p2781_p3 = scmp.lt.s32.totalorder %s3167_s15, %s3831_s6 }
  0x31   : > { %p2778_p4 = pnand %p3187_p2, %p2776_p1  ;;  %p2782_p6 = scmp.lt.s32.totalorder %s2780_s25, %s2775_s19 }
  0x33   : > { %p2779_p13 = pneg %p2778_p4  ;;  %p2783_p7 = por %p2782_p6, %p2781_p3 }
  0x35   : > { %p2784_p11 = pnand %p2783_p7, %p2779_p13 }
  0x37   : > { %2787 = shalt.err (!%p2784_p11)
}
  0x38   : > { %s2788_s28 = scalar_lea.vmem %s3177_s10, 2048  ;;  %s3019_s11 = smov [#allocation9]  }
  0x39   : > { %p2789_p5 = scmp.ne.s32.totalorder %s3177_s10, %s2788_s28  ;;  %s2793_s18 = sshll.u32 %s3019_s11, 4  ;;  %s2794_s18 = int_to_ptr.vmem [resolvable:$false] %s2793_s18 }
  0x3a   : > { %s2795_s22 = scalar_lea.vmem %s2794_s18, 4096  ;;  %p2796_p0 = scmp.lt.s32.totalorder %s3177_s10, %s2794_s18 }
  0x3b   : > { %p2791_p1 = pnand %p2789_p5, %p3187_p2  ;;  %p2797_p8 = scmp.lt.s32.totalorder %s2795_s22, %s2788_s28 }
  0x3d   : > { %p2792_p4 = pneg %p2791_p1  ;;  %p2798_p10 = por %p2797_p8, %p2796_p0 }
  0x3f   : > { %p2799_p12 = pnand %p2798_p10, %p2792_p4 }
  0x41   : > { %2802 = shalt.err (!%p2799_p12)
}
  0x42   : > { %s3862_s19 = smov 64   ;;  %s2814_s11 = scalar_lea.vmem %s295_s13, 2048 }
  0x43   : > { %2528 = dma.hbm_to_vmem [thread:$0]  (!%p3173_p9), %s3167_s15, 2048, %s3177_s10, %s3181_s21, %s3862_s19, %s3862_s19, %s3849_s12  }
  0x44   : > { %p2815_p5 = scmp.ne.s32.totalorder %s295_s13, %s2814_s11  ;;  %p3863_p13 = scmp.ne.s32.totalorder %s3859_s27, 0 }
  0x45   : > { %p2822_p10 = scmp.lt.s32.totalorder %s295_s13, %s295_s13  ;;  %p2823_p12 = scmp.lt.s32.totalorder %s2814_s11, %s2814_s11 }
  0x46   : > { %p3864_p3 = pneg %p3863_p13 }
  0x47   : > { %p2824_p0 = por %p2823_p12, %p2822_p10 }
  0x48   : > { %p2817_p6 = pnand %p2815_p5, %p3864_p3 }
  0x4a   : > { %p2818_p8 = pneg %p2817_p6 }
  0x4c   : > { %p2825_p7 = pnand %p2824_p0, %p2818_p8 }
  0x4e   : > { %2828 = shalt.err (!%p2825_p7)
}
  0x4f   : > { %s3020_s25 = smov 128   ;;  %s3021_s30 = smov 8  }
  0x50   : > { %2518 = dma.hbm_to_vmem [thread:$0]  (!%p3863_p13), %s3825_s0, 2048, %s295_s13, [#allocation4], %s3020_s25, %s3020_s25, %s3021_s30  }
  0x51   : > { %s3022_s15 = smov [#allocation8]   ;;  %s3847_s18 = sshll.u32 %s3147_s29, 6 }
  0x52   : > { %s326_s28 = sshll.u32 %s3022_s15, 4  ;;  %p3865_p1 = pmov %p3864_p3  ;;  %s327_s28 = int_to_ptr.vmem [resolvable:$true] %s326_s28 }
  0x53   : > { %s2840_s22 = scalar_lea.vmem %s327_s28, 1024  ;;  %p2848_p3 = scmp.lt.s32.totalorder %s327_s28, %s327_s28 }
  0x54   : > { %p2841_p11 = scmp.ne.s32.totalorder %s327_s28, %s2840_s22  ;;  %p2849_p6 = scmp.lt.s32.totalorder %s2840_s22, %s2840_s22 }
  0x56   : > { %p2843_p4 = pnand %p2841_p11, %p3865_p1  ;;  %p2850_p8 = por %p2849_p6, %p2848_p3 }
  0x58   : > { %p2844_p5 = pneg %p2843_p4 }
  0x5a   : > { %p2851_p10 = pnand %p2850_p8, %p2844_p5 }
  0x5c   : > { %2854 = shalt.err (!%p2851_p10)
}
  0x5d   : > { %2524 = dma.hbm_to_vmem [thread:$0]  (!%p3863_p13), %s3829_s4, 1024, %s327_s28, [#allocation7], %s3862_s19, %s3862_s19, %s3849_s12  }
  0x5e   : > { %s3848_s25 = sshll.u32 %s3013_s16, 10  ;;  %s368_s30 = scalar_lea.vmem [#allocation11], %s3847_s18 }
  0x5f   : > { %s375_s26 = sshll.u32 %s368_s30, 4  ;;  %s3242_s27 = scalar_lea.hbm %s3832_s7, %s3848_s25  ;;  %s376_s26 = int_to_ptr.vmem [resolvable:$true] %s375_s26 }
  0x60   : > { %s2855_s22 = scalar_lea.hbm %s3242_s27, 1024  ;;  %s2860_s11 = scalar_lea.hbm %s3832_s7, 2048 }
  0x61   : > { %p2856_p12 = scmp.ne.s32.totalorder %s3242_s27, %s2855_s22  ;;  %p2861_p13 = scmp.lt.s32.totalorder %s3242_s27, %s3832_s7 }
  0x62   : > { %p2862_p11 = scmp.lt.s32.totalorder %s2860_s11, %s2855_s22 }
  0x63   : > { %p2858_p0 = pnand %p2856_p12, %p3187_p2 }
  0x64   : > { %p2863_p1 = por %p2862_p11, %p2861_p13 }
  0x65   : > { %p2859_p7 = pneg %p2858_p0 }
  0x67   : > { %p2864_p4 = pnand %p2863_p1, %p2859_p7 }
  0x69   : > { %2867 = shalt.err (!%p2864_p4)
}
  0x6a   : > { %s2868_s10 = scalar_lea.vmem %s376_s26, 1024  ;;  %s3023_s15 = smov [#allocation11]  }
  0x6b   : > { %p2869_p5 = scmp.ne.s32.totalorder %s376_s26, %s2868_s10  ;;  %s2873_s25 = sshll.u32 %s3023_s15, 4  ;;  %s2874_s25 = int_to_ptr.vmem [resolvable:$false] %s2873_s25 }
  0x6c   : > { %s2875_s12 = scalar_lea.vmem %s2874_s25, 2048  ;;  %p2876_p8 = scmp.lt.s32.totalorder %s376_s26, %s2874_s25 }
  0x6d   : > { %p2871_p3 = pnand %p2869_p5, %p3187_p2  ;;  %p2877_p10 = scmp.lt.s32.totalorder %s2875_s12, %s2868_s10 }
  0x6f   : > { %p2872_p6 = pneg %p2871_p3  ;;  %p2878_p12 = por %p2877_p10, %p2876_p8 }
  0x71   : > { %p2879_p0 = pnand %p2878_p12, %p2872_p6 }
  0x73   : > { %2882 = shalt.err (!%p2879_p0)
}
  0x74   : > { %s3866_s18 = smov 4   ;;  %s3867_s22 = sshll.u32 %s3013_s16, 10 }
  0x75   : > { %2531 = dma.hbm_to_vmem [thread:$0]  (!%p3173_p9), %s3242_s27, 1024, %s376_s26, %s3181_s21, %s3862_s19, %s3862_s19, %s3866_s18  }
  0x76   : > { %s3269_s12 = scalar_lea.hbm %s3833_s8, %s3867_s22  ;;  %s3868_s25 = sshll.u32 %s3147_s29, 6 }
  0x77   : > { %s389_s11 = scalar_lea.vmem [#allocation12], %s3868_s25  ;;  %s386_s10 = scalar_lea.sflag [#allocation13], %s3147_s29 }
  0x78   : > { %s396_s30 = sshll.u32 %s389_s11, 4  ;;  %s2883_s15 = scalar_lea.hbm %s3269_s12, 1024  ;;  %s3273_s30 = int_to_ptr.vmem [resolvable:$true] %s396_s30 }
  0x79   : > { %p2884_p7 = scmp.ne.s32.totalorder %s3269_s12, %s2883_s15  ;;  %s2888_s26 = scalar_lea.hbm %s3833_s8, 2048 }
  0x7a   : > { %p2889_p1 = scmp.lt.s32.totalorder %s3269_s12, %s3833_s8  ;;  %p2890_p4 = scmp.lt.s32.totalorder %s2888_s26, %s2883_s15 }
  0x7b   : > { %p2886_p13 = pnand %p2884_p7, %p3187_p2 }
  0x7c   : > { %p2891_p5 = por %p2890_p4, %p2889_p1 }
  0x7d   : > { %p2887_p11 = pneg %p2886_p13 }
  0x7f   : > { %p2892_p3 = pnand %p2891_p5, %p2887_p11 }
  0x81   : > { %2895 = shalt.err (!%p2892_p3)
}
  0x82   : > { %s2896_s29 = scalar_lea.vmem %s3273_s30, 1024  ;;  %s3024_s28 = smov [#allocation12]  }
  0x83   : > { %p2897_p6 = scmp.ne.s32.totalorder %s3273_s30, %s2896_s29  ;;  %s2901_s13 = sshll.u32 %s3024_s28, 4  ;;  %s2902_s13 = int_to_ptr.vmem [resolvable:$false] %s2901_s13 }
  0x84   : > { %s2903_s25 = scalar_lea.vmem %s2902_s13, 2048  ;;  %p2904_p12 = scmp.lt.s32.totalorder %s3273_s30, %s2902_s13 }
  0x85   : > { %p2899_p8 = pnand %p2897_p6, %p3187_p2  ;;  %p2905_p0 = scmp.lt.s32.totalorder %s2903_s25, %s2896_s29 }
  0x87   : > { %p2900_p10 = pneg %p2899_p8  ;;  %p2906_p7 = por %p2905_p0, %p2904_p12 }
  0x89   : > { %p2907_p13 = pnand %p2906_p7, %p2900_p10 }
  0x8b   : > { %2910 = shalt.err (!%p2907_p13)
}
  0x8c   : > { %2534 = dma.hbm_to_vmem [thread:$0]  (!%p3173_p9), %s3269_s12, 1024, %s3273_s30, %s386_s10, %s3862_s19, %s3862_s19, %s3866_s18  }
  0x8d   : > { %p3869_p2 = scmp.ne.s32.totalorder %s3858_s24, 0 }
  0x8e   : > { %p3870_p11 = scmp.eq.s32.totalorder (!%p3869_p2), %s3103_s17, 0 }
  0x8f   : > { %408 = sbr.rel (%p3869_p2) target bundleno = 1511 (0x5e7), region = 56 }
  0x94   : > { %2976 = dma.done.wait (%p3870_p11), [#allocation4], 2048   ;;  %p3871_p1 = pmov %p3870_p11 }
  0x96   : > { %2978 = vsyncadd (%p3871_p1), [#allocation4], 4294965248  ;;  %p3872_p4 = pmov %p3871_p1 }
  0x97   : > { %p3873_p5 = pmov %p3871_p1 }
  0x98   : > { %2980 = dma.done.wait (%p3872_p4), [#allocation7], 2048  }
  0x99   : > { %2982 = vsyncadd (%p3873_p5), [#allocation7], 4294965248  ;;  %s422_s9 = sand.u32 1, %s3103_s17   ;;  %s424_s20 = sand.u32 1, %s3005_s14  }
  0x9a   : > { %s2065_s19 = sshll.u32 %s424_s20, 7  ;;  %s423_s24 = scalar_lea.sflag [#allocation10], %s422_s9 }
  0x9b   : > { %s3311_s18 = scalar_lea.vmem [#allocation9], %s2065_s19  ;;  %p3874_p9 = scmp.ne.s32.totalorder %s3857_s23, 0 }
  0x9d   : > { %2984 = dma.done.wait (%p3874_p9), %s423_s24, 3072  }
  0x9e   : > { %2986 = vsyncadd (%p3874_p9), %s423_s24, 4294964224  ;;  %s2066_s12 = sshll.u32 %s424_s20, 6  ;;  %s441_s30 = scalar_lea.sflag [#allocation13], %s424_s20 }
  0x9f   : > { %s3317_s11 = scalar_lea.vmem [#allocation11], %s2066_s12  ;;  %s3319_s10 = scalar_lea.vmem [#allocation12], %s2066_s12 }
  0xa0   : > { %2988 = dma.done.wait (%p3874_p9), %s441_s30, 1024  }
  0xa1   : > { %2990 = vsyncadd (%p3874_p9), %s441_s30, 4294966272  ;;  %p3875_p3 = scmp.ne.s32.totalorder %s3103_s17, 0 }
  0xa3   : > { %490 = sbr.rel (%p3875_p3) target bundleno = 413 (0x19d), region = 84 }
  0xa8   : > { %v2589_v0 = vld [vmem:[#allocation6 + $0x38] sm:$0xff]   ;;  %v2590_v1 = vld [vmem:[#allocation6 + $0x30] sm:$0xff]   ;;  %v2591_v2 = vld [vmem:[#allocation6 + $0x28] sm:$0xff]  }
  0xa9   : > { %2281 = vmatprep.subr.bf16.mxu0 %v2589_v0  ;;  %2457 = vmatprep.subr.bf16.mxu1 %v2589_v0  ;;  %v2592_v3 = vld [vmem:[#allocation6 + $0x20] sm:$0xff]   ;;  %v492_v5 = vld [vmem:[#allocation3 + $0x8] sm:$0xff]  ;;  %v2593_v10 = vld [vmem:[#allocation6 + $0x18] sm:$0xff]  }
  0xaa   : > { %2282 = vmatpush3.bf16.msra.mxu0 %v2589_v0  ;;  %2465 = vmatpush3.bf16.msra.mxu1 %v2589_v0  ;;  %v491_v4 = vld [vmem:[#allocation3] sm:$0xff]  ;;  %v500_v8 = vld [vmem:[#allocation3 + $0x48] sm:$0xff]  ;;  %v2594_v11 = vld [vmem:[#allocation6 + $0x10] sm:$0xff]  }
  0xab   : > { %2283 = vmatprep.subr.bf16.mxu0 %v2590_v1  ;;  %2458 = vmatprep.subr.bf16.mxu1 %v2590_v1  ;;  %v499_v6 = vld [vmem:[#allocation3 + $0x40] sm:$0xff]  ;;  %v507_v7 = vpack.c.bf16 %v492_v5, %v491_v4  ;;  %v2595_v12 = vld [vmem:[#allocation6 + $0x8] sm:$0xff]   ;;  %v493_v14 = vld [vmem:[#allocation3 + $0x10] sm:$0xff] }
  0xac   : > { %v511_v9 = vpack.c.bf16 %v500_v8, %v499_v6  ;;  %v2596_v13 = vld [vmem:[#allocation6] sm:$0xff]   ;;  %v494_v15 = vld [vmem:[#allocation3 + $0x18] sm:$0xff]  ;;  %v501_v16 = vld [vmem:[#allocation3 + $0x50] sm:$0xff] }
  0xad   : > { %2297 = vmatprep.mubr.bf16.mxu0 %v507_v7  ;;  %v502_v17 = vld [vmem:[#allocation3 + $0x58] sm:$0xff]  ;;  %v495_v18 = vld [vmem:[#allocation3 + $0x20] sm:$0xff]  ;;  %v496_v19 = vld [vmem:[#allocation3 + $0x28] sm:$0xff]  ;;  %v508_v22 = vpack.c.bf16 %v494_v15, %v493_v14 }
  0xae   : > { %2284 = vmatpush3.bf16.msra.mxu0 %v2590_v1  ;;  %2466 = vmatpush3.bf16.msra.mxu1 %v2590_v1  ;;  %v503_v20 = vld [vmem:[#allocation3 + $0x60] sm:$0xff]  ;;  %v504_v21 = vld [vmem:[#allocation3 + $0x68] sm:$0xff]  ;;  %v512_v23 = vpack.c.bf16 %v502_v17, %v501_v16  ;;  %v509_v24 = vpack.c.bf16 %v496_v19, %v495_v18  ;;  %v497_v26 = vld [vmem:[#allocation3 + $0x30] sm:$0xff] }
  0xaf   : > { %2285 = vmatprep.subr.bf16.mxu0 %v2591_v2  ;;  %2459 = vmatprep.subr.bf16.mxu1 %v2591_v2  ;;  %v513_v25 = vpack.c.bf16 %v504_v21, %v503_v20  ;;  %v498_v27 = vld [vmem:[#allocation3 + $0x38] sm:$0xff]  ;;  %v505_v28 = vld [vmem:[#allocation3 + $0x70] sm:$0xff]  ;;  %v2069_v32 = vld [vmem:[%s3828_s3] ss:$0 sm:$0xff] }
  0xb0   : > { %2305 = vmatprep.mubr.bf16.mxu1 %v511_v9  ;;  %v506_v29 = vld [vmem:[#allocation3 + $0x78] sm:$0xff]  ;;  %v510_v30 = vpack.c.bf16 %v498_v27, %v497_v26 }
  0xb1   : > { %v514_v31 = vpack.c.bf16 %v506_v29, %v505_v28 }
  0xb2   : > { %2286 = vmatpush3.bf16.msra.mxu0 %v2591_v2  ;;  %2467 = vmatpush3.bf16.msra.mxu1 %v2591_v2 }
  0xb3   : > { %2287 = vmatprep.subr.bf16.mxu0 %v2592_v3  ;;  %2460 = vmatprep.subr.bf16.mxu1 %v2592_v3 }
  0xb6   : > { %2288 = vmatpush3.bf16.msra.mxu0 %v2592_v3  ;;  %2468 = vmatpush3.bf16.msra.mxu1 %v2592_v3 }
  0xb7   : > { %2289 = vmatprep.subr.bf16.mxu0 %v2593_v10  ;;  %2461 = vmatprep.subr.bf16.mxu1 %v2593_v10 }
  0xba   : > { %2290 = vmatpush3.bf16.msra.mxu0 %v2593_v10  ;;  %2469 = vmatpush3.bf16.msra.mxu1 %v2593_v10 }
  0xbb   : > { %2291 = vmatprep.subr.bf16.mxu0 %v2594_v11  ;;  %2462 = vmatprep.subr.bf16.mxu1 %v2594_v11 }
  0xbe   : > { %2292 = vmatpush3.bf16.msra.mxu0 %v2594_v11  ;;  %2470 = vmatpush3.bf16.msra.mxu1 %v2594_v11 }
  0xbf   : > { %2293 = vmatprep.subr.bf16.mxu0 %v2595_v12  ;;  %2463 = vmatprep.subr.bf16.mxu1 %v2595_v12 }
  0xc2   : > { %2294 = vmatpush3.bf16.msra.mxu0 %v2595_v12  ;;  %2471 = vmatpush3.bf16.msra.mxu1 %v2595_v12 }
  0xc3   : > { %2295 = vmatprep.subr.bf16.mxu0 %v2596_v13  ;;  %2464 = vmatprep.subr.bf16.mxu1 %v2596_v13 }
  0xc6   : > { %2296 = vmatpush3.bf16.msra.mxu0 %v2596_v13  ;;  %2472 = vmatpush3.bf16.msra.mxu1 %v2596_v13 }
  0xc9   : > { %2298 = vmatmul.mubr.bf16.vlgmr.msra.gmra.mxu0 %v508_v22  ;;  %2306 = vmatmul.mubr.bf16.vlgmr.msra.gmra.mxu1 %v512_v23 }
  0xca   : > { %2301 = vmatprep.mubr.bf16.mxu0 %v509_v24  ;;  %2309 = vmatprep.mubr.bf16.mxu1 %v513_v25 }
  0xd1   : > { %2302 = vmatmul.mubr.bf16.gmra.mxu0 %v510_v30  ;;  %2310 = vmatmul.mubr.bf16.gmra.mxu1 %v514_v31 }
 0x189   : > { %v2299_v33 = vpop.f32.mrf.mxu0  ;;  %v2307_v34 = vpop.f32.mrf.mxu1 }
 0x18a   : > { %v629_v35 = vadd.f32 %v2299_v33, %v2069_v32  ;;  %v661_v36 = vadd.f32 %v2307_v34, %v2069_v32 }
 0x18b   : > { %v620_v37 = vpop.f32.mrf.mxu0  ;;  %v652_v38 = vpop.f32.mrf.mxu1 }
 0x18c   : > { %v685_v39 = vmax.f32 %v629_v35, 0.0  ;;  %v693_v40 = vmax.f32 %v661_v36, 0.0  ;;  %v621_v41 = vadd.f32 %v2069_v32, %v620_v37  ;;  %v653_v42 = vadd.f32 %v2069_v32, %v652_v38 }
 0x18d   : > { %v2300_v43 = vpop.f32.mrf.mxu0  ;;  %v2308_v44 = vpop.f32.mrf.mxu1 }
 0x18e   : > { %701 = vst [vmem:[#allocation2 + $0x58] sm:$0xff] %v685_v39  ;;  %709 = vst [vmem:[#allocation2 + $0x10] sm:$0xff] %v693_v40  ;;  %v683_v45 = vmax.f32 %v621_v41, 0.0  ;;  %v691_v46 = vmax.f32 %v653_v42, 0.0  ;;  %v632_v47 = vadd.f32 %v2300_v43, %v2069_v32  ;;  %v664_v48 = vadd.f32 %v2308_v44, %v2069_v32 }
 0x18f   : > { %v623_v49 = vpop.f32.mrf.mxu0  ;;  %v655_v50 = vpop.f32.mrf.mxu1 }
 0x190   : > { %699 = vst [vmem:[#allocation2 + $0x30] sm:$0xff] %v683_v45  ;;  %707 = vst [vmem:[#allocation2 + $0x40] sm:$0xff] %v691_v46  ;;  %v686_v51 = vmax.f32 %v632_v47, 0.0  ;;  %v694_v52 = vmax.f32 %v664_v48, 0.0  ;;  %v624_v53 = vadd.f32 %v2069_v32, %v623_v49  ;;  %v656_v54 = vadd.f32 %v2069_v32, %v655_v50 }
 0x191   : > { %v2303_v55 = vpop.f32.mrf.mxu0  ;;  %v2311_v56 = vpop.f32.mrf.mxu1 }
 0x192   : > { %702 = vst [vmem:[#allocation2 + $0x18] sm:$0xff] %v686_v51  ;;  %710 = vst [vmem:[#allocation2 + $0x38] sm:$0xff] %v694_v52  ;;  %v684_v57 = vmax.f32 %v624_v53, 0.0  ;;  %v692_v58 = vmax.f32 %v656_v54, 0.0  ;;  %v645_v59 = vadd.f32 %v2303_v55, %v2069_v32  ;;  %v677_v60 = vadd.f32 %v2311_v56, %v2069_v32 }
 0x193   : > { %v636_v61 = vpop.f32.mrf.mxu0  ;;  %v668_v62 = vpop.f32.mrf.mxu1 }
 0x194   : > { %700 = vst [vmem:[#allocation2] sm:$0xff] %v684_v57  ;;  %708 = vst [vmem:[#allocation2 + $0x20] sm:$0xff] %v692_v58  ;;  %v689_v63 = vmax.f32 %v645_v59, 0.0  ;;  %v697_v0 = vmax.f32 %v677_v60, 0.0  ;;  %v637_v1 = vadd.f32 %v2069_v32, %v636_v61  ;;  %v669_v2 = vadd.f32 %v2069_v32, %v668_v62 }
 0x195   : > { %v2304_v3 = vpop.f32.mrf.mxu0  ;;  %v2312_v4 = vpop.f32.mrf.mxu1 }
 0x196   : > { %705 = vst [vmem:[#allocation2 + $0x8] sm:$0xff] %v689_v63  ;;  %713 = vst [vmem:[#allocation2 + $0x78] sm:$0xff] %v697_v0  ;;  %v687_v5 = vmax.f32 %v637_v1, 0.0  ;;  %v695_v6 = vmax.f32 %v669_v2, 0.0  ;;  %v648_v7 = vadd.f32 %v2304_v3, %v2069_v32  ;;  %v680_v8 = vadd.f32 %v2312_v4, %v2069_v32 }
 0x197   : > { %v639_v9 = vpop.f32.mrf.mxu0  ;;  %v671_v10 = vpop.f32.mrf.mxu1 }
 0x198   : > { %703 = vst [vmem:[#allocation2 + $0x50] sm:$0xff] %v687_v5  ;;  %711 = vst [vmem:[#allocation2 + $0x60] sm:$0xff] %v695_v6  ;;  %v690_v11 = vmax.f32 %v648_v7, 0.0  ;;  %v698_v12 = vmax.f32 %v680_v8, 0.0  ;;  %v640_v13 = vadd.f32 %v2069_v32, %v639_v9  ;;  %v672_v14 = vadd.f32 %v2069_v32, %v671_v10 }
 0x19a   : > { %706 = vst [vmem:[#allocation2 + $0x48] sm:$0xff] %v690_v11  ;;  %714 = vst [vmem:[#allocation2 + $0x28] sm:$0xff] %v698_v12  ;;  %v688_v15 = vmax.f32 %v640_v13, 0.0  ;;  %v696_v16 = vmax.f32 %v672_v14, 0.0 }
 0x19c   : > { %704 = vst [vmem:[#allocation2 + $0x68] sm:$0xff] %v688_v15  ;;  %712 = vst [vmem:[#allocation2 + $0x70] sm:$0xff] %v696_v16 }
 0x19d PF: > { %v2115_v17 = vld [vmem:[%s3311_s18] sm:$0xff]   ;;  %v2178_v19 = vld [vmem:[%s3311_s18 + $0x8] sm:$0xff]   ;;  %v2179_v24 = vld [vmem:[%s3311_s18 + $0x10] sm:$0xff]   ;;  %p2095_p6 = scmp.ne.s32.totalorder %s3103_s17, 1 }
 0x19e   : > { %v3334_v18 = vld [vmem:[%s3826_s1] ss:$0 sm:$0xff]  ;;  %v2116_v20 = vunpack.c.l.bf16 %v2115_v17  ;;  %v2120_v21 = vunpack.c.l.bf16 %v2178_v19  ;;  %v2117_v22 = vunpack.c.h.bf16 %v2115_v17  ;;  %v2121_v23 = vunpack.c.h.bf16 %v2178_v19  ;;  %v2180_v31 = vld [vmem:[%s3311_s18 + $0x18] sm:$0xff]   ;;  %v2182_v37 = vld [vmem:[%s3311_s18 + $0x28] sm:$0xff]  }
 0x19f   : > { %v2124_v29 = vunpack.c.l.bf16 %v2179_v24  ;;  %v2125_v30 = vunpack.c.h.bf16 %v2179_v24  ;;  %v2181_v32 = vld [vmem:[%s3311_s18 + $0x20] sm:$0xff]   ;;  %v2128_v35 = vunpack.c.l.bf16 %v2180_v31  ;;  %v2129_v36 = vunpack.c.h.bf16 %v2180_v31  ;;  %v2183_v46 = vld [vmem:[%s3311_s18 + $0x30] sm:$0xff]   ;;  %v2184_v51 = vld [vmem:[%s3311_s18 + $0x38] sm:$0xff]  }
 0x1a0   : > { %v3339_v25 = vadd.f32 %v2116_v20, %v3334_v18  ;;  %v3342_v26 = vadd.f32 %v2120_v21, %v3334_v18  ;;  %v3347_v27 = vadd.f32 %v2117_v22, %v3334_v18  ;;  %v3350_v28 = vadd.f32 %v2121_v23, %v3334_v18  ;;  %v2185_v56 = vld [vmem:[%s3311_s18 + $0x40] sm:$0xff]   ;;  %v2186_v61 = vld [vmem:[%s3311_s18 + $0x48] sm:$0xff]   ;;  %v2187_v2 = vld [vmem:[%s3311_s18 + $0x50] sm:$0xff]  }
 0x1a1   : > { %v3357_v33 = vadd.f32 %v2124_v29, %v3334_v18  ;;  %v3360_v34 = vadd.f32 %v2125_v30, %v3334_v18  ;;  %v3366_v38 = vadd.f32 %v2128_v35, %v3334_v18  ;;  %v3369_v39 = vadd.f32 %v2129_v36, %v3334_v18  ;;  %v2188_v7 = vld [vmem:[%s3311_s18 + $0x58] sm:$0xff]   ;;  %v2189_v12 = vld [vmem:[%s3311_s18 + $0x60] sm:$0xff]   ;;  %v2190_v17 = vld [vmem:[%s3311_s18 + $0x68] sm:$0xff]  }
 0x1a2   : > { %834 = vmax.xlane.f32.xlu0 %v3339_v25  ;;  %838 = vmax.xlane.f32.xlu1 %v3342_v26  ;;  %v2132_v40 = vunpack.c.l.bf16 %v2181_v32  ;;  %v2133_v41 = vunpack.c.h.bf16 %v2181_v32  ;;  %v2136_v44 = vunpack.c.l.bf16 %v2182_v37  ;;  %v2137_v45 = vunpack.c.h.bf16 %v2182_v37  ;;  %v2191_v23 = vld [vmem:[%s3311_s18 + $0x70] sm:$0xff]   ;;  %v2192_v32 = vld [vmem:[%s3311_s18 + $0x78] sm:$0xff]  }
 0x1a3   : > { %v2140_v49 = vunpack.c.l.bf16 %v2183_v46  ;;  %v2141_v50 = vunpack.c.h.bf16 %v2183_v46  ;;  %v2144_v54 = vunpack.c.l.bf16 %v2184_v51  ;;  %v2145_v55 = vunpack.c.h.bf16 %v2184_v51  ;;  %v730_v46 = vld [vmem:[#allocation2 + $0x28] sm:$0xff]  ;;  %v728_v51 = vld [vmem:[#allocation2 + $0x70] sm:$0xff] }
 0x1a4   : > { %v3374_v42 = vadd.f32 %v2132_v40, %v3334_v18  ;;  %v3377_v43 = vadd.f32 %v2133_v41, %v3334_v18  ;;  %v3383_v47 = vadd.f32 %v2136_v44, %v3334_v18  ;;  %v3386_v48 = vadd.f32 %v2137_v45, %v3334_v18  ;;  %v729_v45 = vld [vmem:[#allocation2 + $0x78] sm:$0xff] }
 0x1a5   : > { %v3392_v52 = vadd.f32 %v2140_v49, %v3334_v18  ;;  %v3395_v53 = vadd.f32 %v2141_v50, %v3334_v18  ;;  %v3401_v57 = vadd.f32 %v2144_v54, %v3334_v18  ;;  %v3404_v58 = vadd.f32 %v2145_v55, %v3334_v18  ;;  %v727_v49 = vld [vmem:[#allocation2 + $0x60] sm:$0xff] }
 0x1a6   : > { %836 = vmax.xlane.f32.xlu0 %v3347_v27  ;;  %840 = vmax.xlane.f32.xlu1 %v3350_v28  ;;  %v2148_v59 = vunpack.c.l.bf16 %v2185_v56  ;;  %v2149_v60 = vunpack.c.h.bf16 %v2185_v56  ;;  %v2152_v0 = vunpack.c.l.bf16 %v2186_v61  ;;  %v2153_v1 = vunpack.c.h.bf16 %v2186_v61 }
 0x1a7   : > { %v2156_v5 = vunpack.c.l.bf16 %v2187_v2  ;;  %v2157_v6 = vunpack.c.h.bf16 %v2187_v2  ;;  %v2160_v10 = vunpack.c.l.bf16 %v2188_v7  ;;  %v2161_v11 = vunpack.c.h.bf16 %v2188_v7 }
 0x1a8   : > { %v3410_v62 = vadd.f32 %v2148_v59, %v3334_v18  ;;  %v3413_v63 = vadd.f32 %v2149_v60, %v3334_v18  ;;  %v3419_v3 = vadd.f32 %v2152_v0, %v3334_v18  ;;  %v3422_v4 = vadd.f32 %v2153_v1, %v3334_v18 }
 0x1a9   : > { %v3428_v8 = vadd.f32 %v2156_v5, %v3334_v18  ;;  %v3431_v9 = vadd.f32 %v2157_v6, %v3334_v18  ;;  %v3437_v13 = vadd.f32 %v2160_v10, %v3334_v18  ;;  %v3440_v14 = vadd.f32 %v2161_v11, %v3334_v18 }
 0x1aa   : > { %842 = vmax.xlane.f32.xlu0 %v3357_v33  ;;  %844 = vmax.xlane.f32.xlu1 %v3360_v34  ;;  %v2164_v15 = vunpack.c.l.bf16 %v2189_v12  ;;  %v2165_v16 = vunpack.c.h.bf16 %v2189_v12  ;;  %v2168_v21 = vunpack.c.l.bf16 %v2190_v17  ;;  %v2169_v22 = vunpack.c.h.bf16 %v2190_v17 }
 0x1ab   : > { %v2172_v30 = vunpack.c.l.bf16 %v2191_v23  ;;  %v2173_v31 = vunpack.c.h.bf16 %v2191_v23  ;;  %v2176_v37 = vunpack.c.l.bf16 %v2192_v32  ;;  %v2177_v40 = vunpack.c.h.bf16 %v2192_v32 }
 0x1ac   : > { %v3446_v19 = vadd.f32 %v2164_v15, %v3334_v18  ;;  %v3449_v20 = vadd.f32 %v2165_v16, %v3334_v18  ;;  %v3455_v24 = vadd.f32 %v2168_v21, %v3334_v18  ;;  %v3458_v29 = vadd.f32 %v2169_v22, %v3334_v18 }
 0x1ad   : > { %v3464_v35 = vadd.f32 %v2172_v30, %v3334_v18  ;;  %v3467_v36 = vadd.f32 %v2173_v31, %v3334_v18  ;;  %v3472_v41 = vadd.f32 %v2176_v37, %v3334_v18  ;;  %v3475_v44 = vadd.f32 %v2177_v40, %v3334_v18 }
 0x1ae   : > { %846 = vmax.xlane.f32.xlu0 %v3366_v38  ;;  %848 = vmax.xlane.f32.xlu1 %v3369_v39  ;;  %v1145_v50 = vpack.c.bf16 %v730_v46, %v729_v45  ;;  %v1144_v54 = vpack.c.bf16 %v728_v51, %v727_v49 }
 0x1b0   : > { %2313 = vmatprep.subr.bf16.mxu0 %v1145_v50 }
 0x1b1   : > { %2314 = vmatpush3.bf16.msra.mxu0 %v1145_v50 }
 0x1b2   : > { %850 = vmax.xlane.f32.xlu0 %v3374_v42  ;;  %852 = vmax.xlane.f32.xlu1 %v3377_v43 }
 0x1b3   : > { %2315 = vmatprep.subr.bf16.mxu0 %v1144_v54 }
 0x1b5   : > { %2316 = vmatpush3.bf16.msra.mxu0 %v1144_v54 }
 0x1b6   : > { %854 = vmax.xlane.f32.xlu0 %v3383_v47  ;;  %856 = vmax.xlane.f32.xlu1 %v3386_v48 }
 0x1ba   : > { %858 = vmax.xlane.f32.xlu0 %v3392_v52  ;;  %860 = vmax.xlane.f32.xlu1 %v3395_v53 }
 0x1be   : > { %862 = vmax.xlane.f32.xlu0 %v3401_v57  ;;  %864 = vmax.xlane.f32.xlu1 %v3404_v58 }
 0x1c2   : > { %866 = vmax.xlane.f32.xlu0 %v3410_v62  ;;  %868 = vmax.xlane.f32.xlu1 %v3413_v63 }
 0x1c6   : > { %870 = vmax.xlane.f32.xlu0 %v3419_v3  ;;  %872 = vmax.xlane.f32.xlu1 %v3422_v4 }
 0x1ca   : > { %874 = vmax.xlane.f32.xlu0 %v3428_v8  ;;  %876 = vmax.xlane.f32.xlu1 %v3431_v9 }
 0x1ce   : > { %878 = vmax.xlane.f32.xlu0 %v3437_v13  ;;  %880 = vmax.xlane.f32.xlu1 %v3440_v14 }
 0x1d2   : > { %882 = vmax.xlane.f32.xlu0 %v3446_v19  ;;  %884 = vmax.xlane.f32.xlu1 %v3449_v20 }
 0x1d6   : > { %886 = vmax.xlane.f32.xlu0 %v3455_v24  ;;  %888 = vmax.xlane.f32.xlu1 %v3458_v29 }
 0x1da   : > { %890 = vmax.xlane.f32.xlu0 %v3464_v35  ;;  %892 = vmax.xlane.f32.xlu1 %v3467_v36 }
 0x1de   : > { %894 = vmax.xlane.f32.xlu0 %v3472_v41  ;;  %896 = vmax.xlane.f32.xlu1 %v3475_v44 }
 0x22b   : > { %v835_v55 = vpop.xlane.xlu0 %834  ;;  %v839_v56 = vpop.xlane.xlu1 %838 }
 0x22c   : > { %v898_v59 = vsub.f32 %v3339_v25, %v835_v55  ;;  %v900_v18 = vsub.f32 %v3342_v26, %v839_v56 }
 0x22e   : > { %v930_v60 = vmul.f32 1.442695, %v898_v59  ;;  %v934_v61 = vmul.f32 1.442695, %v900_v18 }
 0x22f   : > { %v837_v0 = vpop.xlane.xlu0 %836  ;;  %v841_v1 = vpop.xlane.xlu1 %840 }
 0x230   : > { %2613 = vpow2.f32 %v930_v60  ;;  %v899_v2 = vsub.f32 %v3347_v27, %v837_v0  ;;  %v901_v5 = vsub.f32 %v3350_v28, %v841_v1  ;;  %v725_v0 = vld [vmem:[#allocation2 + $0x10] sm:$0xff]  ;;  %v726_v1 = vld [vmem:[#allocation2 + $0x38] sm:$0xff] }
 0x231   : > { %2615 = vpow2.f32 %v934_v61 }
 0x232   : > { %v932_v6 = vmul.f32 1.442695, %v899_v2  ;;  %v936_v7 = vmul.f32 1.442695, %v901_v5  ;;  %v1143_v2 = vpack.c.bf16 %v726_v1, %v725_v0 }
 0x233   : > { %v843_v10 = vpop.xlane.xlu0 %842  ;;  %v845_v11 = vpop.xlane.xlu1 %844 }
 0x234   : > { %2617 = vpow2.f32 %v932_v6  ;;  %v902_v12 = vsub.f32 %v3357_v33, %v843_v10  ;;  %v903_v25 = vsub.f32 %v3360_v34, %v845_v11  ;;  %2317 = vmatprep.subr.bf16.mxu0 %v1143_v2 }
 0x235   : > { %2619 = vpow2.f32 %v936_v7  ;;  %2318 = vmatpush3.bf16.msra.mxu0 %v1143_v2 }
 0x236   : > { %v938_v26 = vmul.f32 1.442695, %v902_v12  ;;  %v940_v15 = vmul.f32 1.442695, %v903_v25  ;;  %v723_v25 = vld [vmem:[#allocation2 + $0x40] sm:$0xff] }
 0x237   : > { %v847_v16 = vpop.xlane.xlu0 %846  ;;  %v849_v17 = vpop.xlane.xlu1 %848 }
 0x238   : > { %2621 = vpow2.f32 %v938_v26  ;;  %v904_v27 = vsub.f32 %v3366_v38, %v847_v16  ;;  %v905_v28 = vsub.f32 %v3369_v39, %v849_v17  ;;  %v724_v26 = vld [vmem:[#allocation2 + $0x20] sm:$0xff] }
 0x239   : > { %2623 = vpow2.f32 %v940_v15  ;;  %v1142_v16 = vpack.c.bf16 %v724_v26, %v723_v25 }
 0x23a   : > { %v942_v21 = vmul.f32 1.442695, %v904_v27  ;;  %v944_v22 = vmul.f32 1.442695, %v905_v28 }
 0x23b   : > { %v851_v23 = vpop.xlane.xlu0 %850  ;;  %v853_v30 = vpop.xlane.xlu1 %852  ;;  %2319 = vmatprep.subr.bf16.mxu0 %v1142_v16 }
 0x23c   : > { %2625 = vpow2.f32 %v942_v21  ;;  %v906_v33 = vsub.f32 %v3374_v42, %v851_v23  ;;  %v907_v34 = vsub.f32 %v3377_v43, %v853_v30  ;;  %2320 = vmatpush3.bf16.msra.mxu0 %v1142_v16  ;;  %v721_v23 = vld [vmem:[#allocation2 + $0x8] sm:$0xff] }
 0x23d   : > { %v3489_v31 = vpop.eup %2613  ;;  %2627 = vpow2.f32 %v944_v22  ;;  %v722_v30 = vld [vmem:[#allocation2 + $0x48] sm:$0xff] }
 0x23e   : > { %v946_v32 = vmul.f32 1.442695, %v906_v33  ;;  %994 = vadd.xlane.f32.xlu0 %v3489_v31  ;;  %v948_v37 = vmul.f32 1.442695, %v907_v34  ;;  %v3492_v38 = vpop.eup %2615  ;;  %v1141_v34 = vpack.c.bf16 %v722_v30, %v721_v23 }
 0x23f   : > { %v855_v39 = vpop.xlane.xlu0 %854  ;;  %v857_v40 = vpop.xlane.xlu1 %856 }
 0x240   : > { %2629 = vpow2.f32 %v946_v32  ;;  %v908_v45 = vsub.f32 %v3383_v47, %v855_v39  ;;  %v909_v46 = vsub.f32 %v3386_v48, %v857_v40  ;;  %2321 = vmatprep.subr.bf16.mxu0 %v1141_v34 }
 0x241   : > { %v3496_v49 = vpop.eup %2617  ;;  %2631 = vpow2.f32 %v948_v37  ;;  %2322 = vmatpush3.bf16.msra.mxu0 %v1141_v34 }
 0x242   : > { %v950_v42 = vmul.f32 1.442695, %v908_v45  ;;  %998 = vadd.xlane.f32.xlu0 %v3492_v38  ;;  %996 = vadd.xlane.f32.xlu1 %v3496_v49  ;;  %v952_v43 = vmul.f32 1.442695, %v909_v46  ;;  %v3500_v50 = vpop.eup %2619  ;;  %v719_v46 = vld [vmem:[#allocation2 + $0x50] sm:$0xff] }
 0x243   : > { %v859_v51 = vpop.xlane.xlu0 %858  ;;  %v861_v54 = vpop.xlane.xlu1 %860 }
 0x244   : > { %2633 = vpow2.f32 %v950_v42  ;;  %v910_v55 = vsub.f32 %v3392_v52, %v859_v51  ;;  %v911_v47 = vsub.f32 %v3395_v53, %v861_v54  ;;  %v720_v42 = vld [vmem:[#allocation2 + $0x68] sm:$0xff] }
 0x245   : > { %v3504_v56 = vpop.eup %2621  ;;  %2635 = vpow2.f32 %v952_v43  ;;  %v1140_v51 = vpack.c.bf16 %v720_v42, %v719_v46 }
 0x246   : > { %v954_v48 = vmul.f32 1.442695, %v910_v55  ;;  %1000 = vadd.xlane.f32.xlu1 %v3500_v50  ;;  %1002 = vadd.xlane.f32.xlu0 %v3504_v56  ;;  %v956_v59 = vmul.f32 1.442695, %v911_v47  ;;  %v3508_v18 = vpop.eup %2623 }
 0x247   : > { %v863_v60 = vpop.xlane.xlu0 %862  ;;  %v865_v61 = vpop.xlane.xlu1 %864  ;;  %2323 = vmatprep.subr.bf16.mxu0 %v1140_v51 }
 0x248   : > { %2637 = vpow2.f32 %v954_v48  ;;  %v912_v52 = vsub.f32 %v3401_v57, %v863_v60  ;;  %v913_v53 = vsub.f32 %v3404_v58, %v865_v61  ;;  %2324 = vmatpush3.bf16.msra.mxu0 %v1140_v51  ;;  %v717_v60 = vld [vmem:[#allocation2 + $0x58] sm:$0xff] }
 0x249   : > { %v3512_v5 = vpop.eup %2625  ;;  %2639 = vpow2.f32 %v956_v59  ;;  %v718_v61 = vld [vmem:[#allocation2 + $0x18] sm:$0xff] }
 0x24a   : > { %v958_v6 = vmul.f32 1.442695, %v912_v52  ;;  %1004 = vadd.xlane.f32.xlu1 %v3508_v18  ;;  %1006 = vadd.xlane.f32.xlu0 %v3512_v5  ;;  %v960_v7 = vmul.f32 1.442695, %v913_v53  ;;  %v3516_v10 = vpop.eup %2627  ;;  %v1139_v1 = vpack.c.bf16 %v718_v61, %v717_v60 }
 0x24b   : > { %v867_v11 = vpop.xlane.xlu0 %866  ;;  %v869_v12 = vpop.xlane.xlu1 %868 }
 0x24c   : > { %2641 = vpow2.f32 %v958_v6  ;;  %v914_v57 = vsub.f32 %v3410_v62, %v867_v11  ;;  %v915_v58 = vsub.f32 %v3413_v63, %v869_v12  ;;  %2325 = vmatprep.subr.bf16.mxu0 %v1139_v1  ;;  %v715_v11 = vld [vmem:[#allocation2 + $0x30] sm:$0xff]  ;;  %v716_v12 = vld [vmem:[#allocation2] sm:$0xff] }
 0x24d   : > { %v3520_v15 = vpop.eup %2629  ;;  %2643 = vpow2.f32 %v960_v7  ;;  %2326 = vmatpush3.bf16.msra.mxu0 %v1139_v1 }
 0x24e   : > { %v962_v17 = vmul.f32 1.442695, %v914_v57  ;;  %1008 = vadd.xlane.f32.xlu1 %v3516_v10  ;;  %1010 = vadd.xlane.f32.xlu0 %v3520_v15  ;;  %v964_v27 = vmul.f32 1.442695, %v915_v58  ;;  %v3524_v28 = vpop.eup %2631  ;;  %v1138_v58 = vpack.c.bf16 %v716_v12, %v715_v11 }
 0x24f   : > { %v871_v21 = vpop.xlane.xlu0 %870  ;;  %v873_v22 = vpop.xlane.xlu1 %872 }
 0x250   : > { %2645 = vpow2.f32 %v962_v17  ;;  %v916_v62 = vsub.f32 %v3419_v3, %v871_v21  ;;  %v917_v63 = vsub.f32 %v3422_v4, %v873_v22  ;;  %2327 = vmatprep.subr.bf16.mxu0 %v1138_v58 }
 0x251   : > { %v3528_v33 = vpop.eup %2633  ;;  %2647 = vpow2.f32 %v964_v27  ;;  %2328 = vmatpush3.bf16.msra.mxu0 %v1138_v58 }
 0x252   : > { %v966_v32 = vmul.f32 1.442695, %v916_v62  ;;  %1012 = vadd.xlane.f32.xlu1 %v3524_v28  ;;  %1014 = vadd.xlane.f32.xlu0 %v3528_v33  ;;  %v968_v37 = vmul.f32 1.442695, %v917_v63  ;;  %v3532_v39 = vpop.eup %2635 }
 0x253   : > { %v875_v40 = vpop.xlane.xlu0 %874  ;;  %v877_v45 = vpop.xlane.xlu1 %876 }
 0x254   : > { %2649 = vpow2.f32 %v966_v32  ;;  %v918_v3 = vsub.f32 %v3428_v8, %v875_v40  ;;  %v919_v4 = vsub.f32 %v3431_v9, %v877_v45 }
 0x255   : > { %v3536_v43 = vpop.eup %2637  ;;  %2651 = vpow2.f32 %v968_v37 }
 0x256   : > { %v970_v54 = vmul.f32 1.442695, %v918_v3  ;;  %1016 = vadd.xlane.f32.xlu1 %v3532_v39  ;;  %1018 = vadd.xlane.f32.xlu0 %v3536_v43  ;;  %v972_v55 = vmul.f32 1.442695, %v919_v4  ;;  %v3540_v47 = vpop.eup %2639 }
 0x257   : > { %v879_v48 = vpop.xlane.xlu0 %878  ;;  %v881_v59 = vpop.xlane.xlu1 %880 }
 0x258   : > { %2653 = vpow2.f32 %v970_v54  ;;  %v920_v8 = vsub.f32 %v3437_v13, %v879_v48  ;;  %v921_v9 = vsub.f32 %v3440_v14, %v881_v59 }
 0x259   : > { %v3544_v0 = vpop.eup %2641  ;;  %2655 = vpow2.f32 %v972_v55 }
 0x25a   : > { %v974_v52 = vmul.f32 1.442695, %v920_v8  ;;  %1020 = vadd.xlane.f32.xlu1 %v3540_v47  ;;  %1022 = vadd.xlane.f32.xlu0 %v3544_v0  ;;  %v976_v53 = vmul.f32 1.442695, %v921_v9  ;;  %v3548_v2 = vpop.eup %2643 }
 0x25b   : > { %v883_v6 = vpop.xlane.xlu0 %882  ;;  %v885_v7 = vpop.xlane.xlu1 %884 }
 0x25c   : > { %2657 = vpow2.f32 %v974_v52  ;;  %v922_v13 = vsub.f32 %v3446_v19, %v883_v6  ;;  %v923_v14 = vsub.f32 %v3449_v20, %v885_v7 }
 0x25d   : > { %v3552_v57 = vpop.eup %2645  ;;  %2659 = vpow2.f32 %v976_v53 }
 0x25e   : > { %v978_v25 = vmul.f32 1.442695, %v922_v13  ;;  %1024 = vadd.xlane.f32.xlu1 %v3548_v2  ;;  %1026 = vadd.xlane.f32.xlu0 %v3552_v57  ;;  %v980_v26 = vmul.f32 1.442695, %v923_v14  ;;  %v3556_v16 = vpop.eup %2647 }
 0x25f   : > { %v887_v17 = vpop.xlane.xlu0 %886  ;;  %v889_v27 = vpop.xlane.xlu1 %888 }
 0x260   : > { %2661 = vpow2.f32 %v978_v25  ;;  %v924_v19 = vsub.f32 %v3455_v24, %v887_v17  ;;  %v925_v20 = vsub.f32 %v3458_v29, %v889_v27 }
 0x261   : > { %v3560_v21 = vpop.eup %2649  ;;  %2663 = vpow2.f32 %v980_v26 }
 0x262   : > { %v982_v22 = vmul.f32 1.442695, %v924_v19  ;;  %1028 = vadd.xlane.f32.xlu1 %v3556_v16  ;;  %1030 = vadd.xlane.f32.xlu0 %v3560_v21  ;;  %v984_v62 = vmul.f32 1.442695, %v925_v20  ;;  %v3564_v63 = vpop.eup %2651 }
 0x263   : > { %v891_v23 = vpop.xlane.xlu0 %890  ;;  %v893_v30 = vpop.xlane.xlu1 %892 }
 0x264   : > { %2665 = vpow2.f32 %v982_v22  ;;  %v926_v34 = vsub.f32 %v3464_v35, %v891_v23  ;;  %v927_v24 = vsub.f32 %v3467_v36, %v893_v30 }
 0x265   : > { %v3568_v29 = vpop.eup %2653  ;;  %2667 = vpow2.f32 %v984_v62 }
 0x266   : > { %v986_v32 = vmul.f32 1.442695, %v926_v34  ;;  %1032 = vadd.xlane.f32.xlu1 %v3564_v63  ;;  %1034 = vadd.xlane.f32.xlu0 %v3568_v29  ;;  %v988_v37 = vmul.f32 1.442695, %v927_v24  ;;  %v3572_v40 = vpop.eup %2655 }
 0x267   : > { %v895_v45 = vpop.xlane.xlu0 %894  ;;  %v897_v3 = vpop.xlane.xlu1 %896 }
 0x268   : > { %2669 = vpow2.f32 %v986_v32  ;;  %v928_v4 = vsub.f32 %v3472_v41, %v895_v45  ;;  %v929_v35 = vsub.f32 %v3475_v44, %v897_v3 }
 0x269   : > { %v3576_v46 = vpop.eup %2657  ;;  %2671 = vpow2.f32 %v988_v37 }
 0x26a   : > { %v990_v36 = vmul.f32 1.442695, %v928_v4  ;;  %1036 = vadd.xlane.f32.xlu1 %v3572_v40  ;;  %1038 = vadd.xlane.f32.xlu0 %v3576_v46  ;;  %v992_v42 = vmul.f32 1.442695, %v929_v35  ;;  %v3580_v51 = vpop.eup %2659 }
 0x26c   : > { %2673 = vpow2.f32 %v990_v36 }
 0x26d   : > { %v3582_v54 = vpop.eup %2661  ;;  %2675 = vpow2.f32 %v992_v42 }
 0x26e   : > { %1040 = vadd.xlane.f32.xlu1 %v3580_v51  ;;  %1042 = vadd.xlane.f32.xlu0 %v3582_v54  ;;  %v3586_v41 = vpop.eup %2663 }
 0x271   : > { %v3588_v44 = vpop.eup %2665 }
 0x272   : > { %1044 = vadd.xlane.f32.xlu1 %v3586_v41  ;;  %1046 = vadd.xlane.f32.xlu0 %v3588_v44  ;;  %v3592_v55 = vpop.eup %2667 }
 0x275   : > { %v3594_v48 = vpop.eup %2669 }
 0x276   : > { %1048 = vadd.xlane.f32.xlu1 %v3592_v55  ;;  %1050 = vadd.xlane.f32.xlu0 %v3594_v48  ;;  %v3598_v59 = vpop.eup %2671 }
 0x279   : > { %v3600_v8 = vpop.eup %2673 }
 0x27a   : > { %1052 = vadd.xlane.f32.xlu1 %v3598_v59  ;;  %1054 = vadd.xlane.f32.xlu0 %v3600_v8  ;;  %v3604_v9 = vpop.eup %2675 }
 0x27e   : > { %1056 = vadd.xlane.f32.xlu1 %v3604_v9 }
 0x2c7   : > { %v995_v60 = vpop.xlane.xlu0 %994 }
 0x2c8   : > { %2677 = vrcp.f32 %v995_v60 }
 0x2cb   : > { %v997_v61 = vpop.xlane.xlu1 %996  ;;  %v999_v1 = vpop.xlane.xlu0 %998 }
 0x2cc   : > { %2679 = vrcp.f32 %v997_v61 }
 0x2cd   : > { %2681 = vrcp.f32 %v999_v1 }
 0x2cf   : > { %v1001_v52 = vpop.xlane.xlu1 %1000  ;;  %v1003_v53 = vpop.xlane.xlu0 %1002 }
 0x2d0   : > { %2683 = vrcp.f32 %v1001_v52 }
 0x2d1   : > { %2685 = vrcp.f32 %v1003_v53 }
 0x2d3   : > { %v1005_v6 = vpop.xlane.xlu1 %1004  ;;  %v1007_v7 = vpop.xlane.xlu0 %1006 }
 0x2d4   : > { %2687 = vrcp.f32 %v1005_v6 }
 0x2d5   : > { %2689 = vrcp.f32 %v1007_v7  ;;  %v2678_v13 = vpop.eup %2677 }
 0x2d6   : > { %v1059_v58 = vmul.f32 %v2678_v13, %v3489_v31 }
 0x2d7   : > { %v1009_v14 = vpop.xlane.xlu1 %1008  ;;  %v1011_v11 = vpop.xlane.xlu0 %1010 }
 0x2d8   : > { %2691 = vrcp.f32 %v1009_v14 }
 0x2d9   : > { %v2680_v12 = vpop.eup %2679  ;;  %2693 = vrcp.f32 %v1011_v11 }
 0x2da   : > { %v1061_v25 = vmul.f32 %v2680_v12, %v3496_v49  ;;  %v2682_v26 = vpop.eup %2681 }
 0x2db   : > { %v1013_v17 = vpop.xlane.xlu1 %1012  ;;  %v1015_v27 = vpop.xlane.xlu0 %1014  ;;  %v1063_v22 = vmul.f32 %v2682_v26, %v3492_v38 }
 0x2dc   : > { %2695 = vrcp.f32 %v1013_v17  ;;  %v1122_v19 = vpack.c.bf16 %v1061_v25, %v1059_v58 }
 0x2dd   : > { %v2684_v20 = vpop.eup %2683  ;;  %2697 = vrcp.f32 %v1015_v27 }
 0x2de   : > { %2329 = vmatprep.mubr.bf16.mxu0 %v1122_v19  ;;  %v1065_v62 = vmul.f32 %v2684_v20, %v3500_v50  ;;  %v2686_v23 = vpop.eup %2685 }
 0x2df   : > { %v1017_v30 = vpop.xlane.xlu1 %1016  ;;  %v1019_v34 = vpop.xlane.xlu0 %1018  ;;  %v1067_v49 = vmul.f32 %v2686_v23, %v3504_v56 }
 0x2e0   : > { %2699 = vrcp.f32 %v1017_v30  ;;  %v1123_v24 = vpack.c.bf16 %v1065_v62, %v1063_v22 }
 0x2e1   : > { %v2688_v31 = vpop.eup %2687  ;;  %2701 = vrcp.f32 %v1019_v34 }
 0x2e2   : > { %2330 = vmatmul.mubr.bf16.vlgmr.msra.gmra.mxu0 %v1123_v24  ;;  %v1069_v32 = vmul.f32 %v2688_v31, %v3508_v18  ;;  %v2690_v37 = vpop.eup %2689 }
 0x2e3   : > { %v1021_v45 = vpop.xlane.xlu1 %1020  ;;  %v1023_v3 = vpop.xlane.xlu0 %1022  ;;  %v1071_v50 = vmul.f32 %v2690_v37, %v3512_v5 }
 0x2e4   : > { %2703 = vrcp.f32 %v1021_v45  ;;  %v1124_v4 = vpack.c.bf16 %v1069_v32, %v1067_v49 }
 0x2e5   : > { %v2692_v38 = vpop.eup %2691  ;;  %2705 = vrcp.f32 %v1023_v3 }
 0x2e6   : > { %2333 = vmatprep.mubr.bf16.mxu0 %v1124_v4  ;;  %v1073_v35 = vmul.f32 %v2692_v38, %v3516_v10  ;;  %v2694_v36 = vpop.eup %2693 }
 0x2e7   : > { %v1025_v42 = vpop.xlane.xlu1 %1024  ;;  %v1027_v60 = vpop.xlane.xlu0 %1026  ;;  %v1075_v18 = vmul.f32 %v2694_v36, %v3520_v15 }
 0x2e8   : > { %2707 = vrcp.f32 %v1025_v42  ;;  %v1125_v61 = vpack.c.bf16 %v1073_v35, %v1071_v50 }
 0x2e9   : > { %v2696_v56 = vpop.eup %2695  ;;  %2709 = vrcp.f32 %v1027_v60 }
 0x2ea   : > { %2334 = vmatmul.mubr.bf16.gmra.mxu0 %v1125_v61  ;;  %v1077_v1 = vmul.f32 %v2696_v56, %v3524_v28  ;;  %v2698_v52 = vpop.eup %2697 }
 0x2eb   : > { %v1029_v53 = vpop.xlane.xlu1 %1028  ;;  %v1031_v6 = vpop.xlane.xlu0 %1030  ;;  %v1079_v10 = vmul.f32 %v2698_v52, %v3528_v33 }
 0x2ec   : > { %2711 = vrcp.f32 %v1029_v53  ;;  %v1126_v7 = vpack.c.bf16 %v1077_v1, %v1075_v18 }
 0x2ed   : > { %v2700_v5 = vpop.eup %2699  ;;  %2713 = vrcp.f32 %v1031_v6 }
 0x2ee   : > { %2337 = vmatprep.mubr.bf16.mxu0 %v1126_v7  ;;  %v1081_v13 = vmul.f32 %v2700_v5, %v3532_v39  ;;  %v2702_v14 = vpop.eup %2701 }
 0x2ef   : > { %v1033_v11 = vpop.xlane.xlu1 %1032  ;;  %v1035_v12 = vpop.xlane.xlu0 %1034  ;;  %v1083_v28 = vmul.f32 %v2702_v14, %v3536_v43 }
 0x2f0   : > { %2715 = vrcp.f32 %v1033_v11  ;;  %v1127_v58 = vpack.c.bf16 %v1081_v13, %v1079_v10 }
 0x2f1   : > { %v2704_v15 = vpop.eup %2703  ;;  %2717 = vrcp.f32 %v1035_v12 }
 0x2f2   : > { %2338 = vmatmul.mubr.bf16.gmra.mxu0 %v1127_v58  ;;  %v1085_v25 = vmul.f32 %v2704_v15, %v3540_v47  ;;  %v2706_v26 = vpop.eup %2705  ;;  %v2597_v15 = vld [vmem:[%s3319_s10 + $0x38] sm:$0xff]  }
 0x2f3   : > { %v1037_v17 = vpop.xlane.xlu1 %1036  ;;  %v1039_v27 = vpop.xlane.xlu0 %1038  ;;  %v1087_v39 = vmul.f32 %v2706_v26, %v3544_v0  ;;  %2361 = vmatprep.subr.bf16.mxu1 %v2597_v15  ;;  %v2604_v26 = vld [vmem:[%s3319_s10] sm:$0xff]  }
 0x2f4   : > { %2719 = vrcp.f32 %v1037_v17  ;;  %v1128_v19 = vpack.c.bf16 %v1085_v25, %v1083_v28  ;;  %2362 = vmatpush3.bf16.msra.mxu1 %v2597_v15  ;;  %v2600_v28 = vld [vmem:[%s3319_s10 + $0x20] sm:$0xff]   ;;  %v2603_v25 = vld [vmem:[%s3319_s10 + $0x8] sm:$0xff]   ;;  %v2605_v17 = vld [vmem:[%s3317_s11 + $0x38] sm:$0xff]  }
 0x2f5   : > { %v2708_v33 = vpop.eup %2707  ;;  %2721 = vrcp.f32 %v1039_v27 }
 0x2f6   : > { %2341 = vmatprep.mubr.bf16.mxu0 %v1128_v19  ;;  %v1089_v20 = vmul.f32 %v2708_v33, %v3548_v2  ;;  %v2710_v22 = vpop.eup %2709 }
 0x2f7   : > { %v1041_v62 = vpop.xlane.xlu1 %1040  ;;  %v1043_v23 = vpop.xlane.xlu0 %1042  ;;  %v1091_v47 = vmul.f32 %v2710_v22, %v3552_v57 }
 0x2f8   : > { %2723 = vrcp.f32 %v1041_v62  ;;  %v1129_v30 = vpack.c.bf16 %v1089_v20, %v1087_v39 }
 0x2f9   : > { %v2712_v43 = vpop.eup %2711  ;;  %2725 = vrcp.f32 %v1043_v23 }
 0x2fa   : > { %2342 = vmatmul.mubr.bf16.gmra.mxu0 %v1129_v30  ;;  %v1093_v34 = vmul.f32 %v2712_v43, %v3556_v16  ;;  %v2714_v24 = vpop.eup %2713 }
 0x2fb   : > { %v1045_v31 = vpop.xlane.xlu1 %1044  ;;  %v1047_v49 = vpop.xlane.xlu0 %1046  ;;  %v1095_v2 = vmul.f32 %v2714_v24, %v3560_v21 }
 0x2fc   : > { %2727 = vrcp.f32 %v1045_v31  ;;  %v1130_v32 = vpack.c.bf16 %v1093_v34, %v1091_v47 }
 0x2fd   : > { %v2716_v0 = vpop.eup %2715  ;;  %2729 = vrcp.f32 %v1047_v49 }
 0x2fe   : > { %2345 = vmatprep.mubr.bf16.mxu0 %v1130_v32  ;;  %v1097_v37 = vmul.f32 %v2716_v0, %v3564_v63  ;;  %v2718_v45 = vpop.eup %2717 }
 0x2ff   : > { %v1049_v3 = vpop.xlane.xlu1 %1048  ;;  %v1051_v4 = vpop.xlane.xlu0 %1050  ;;  %v1099_v16 = vmul.f32 %v2718_v45, %v3568_v29 }
 0x300   : > { %2731 = vrcp.f32 %v1049_v3  ;;  %v1131_v38 = vpack.c.bf16 %v1097_v37, %v1095_v2 }
 0x301   : > { %v2720_v57 = vpop.eup %2719  ;;  %2733 = vrcp.f32 %v1051_v4 }
 0x302   : > { %2346 = vmatmul.mubr.bf16.gmra.mxu0 %v1131_v38  ;;  %v1101_v50 = vmul.f32 %v2720_v57, %v3572_v40  ;;  %v2722_v35 = vpop.eup %2721 }
 0x303   : > { %v1053_v36 = vpop.xlane.xlu1 %1052  ;;  %v1055_v42 = vpop.xlane.xlu0 %1054  ;;  %v1103_v63 = vmul.f32 %v2722_v35, %v3576_v46 }
 0x304   : > { %2735 = vrcp.f32 %v1053_v36  ;;  %v1132_v60 = vpack.c.bf16 %v1101_v50, %v1099_v16  ;;  %v2606_v36 = vld [vmem:[%s3317_s11 + $0x30] sm:$0xff]  }
 0x305   : > { %v2724_v21 = vpop.eup %2723  ;;  %2737 = vrcp.f32 %v1055_v42 }
 0x306   : > { %2349 = vmatprep.mubr.bf16.mxu0 %v1132_v60  ;;  %v1105_v61 = vmul.f32 %v2724_v21, %v3580_v51  ;;  %v2726_v56 = vpop.eup %2725  ;;  %v2607_v21 = vld [vmem:[%s3317_s11 + $0x28] sm:$0xff]  }
 0x307   : > { %v1057_v18 = vpop.xlane.xlu1 %1056  ;;  %v1107_v29 = vmul.f32 %v2726_v56, %v3582_v54 }
 0x308   : > { %2739 = vrcp.f32 %v1057_v18  ;;  %v1133_v1 = vpack.c.bf16 %v1105_v61, %v1103_v63 }
 0x309   : > { %v2728_v52 = vpop.eup %2727 }
 0x30a   : > { %2350 = vmatmul.mubr.bf16.gmra.mxu0 %v1133_v1  ;;  %v1109_v40 = vmul.f32 %v2728_v52, %v3586_v41  ;;  %v2730_v53 = vpop.eup %2729  ;;  %v2608_v1 = vld [vmem:[%s3317_s11 + $0x20] sm:$0xff]  }
 0x30b   : > { %v1111_v5 = vmul.f32 %v2730_v53, %v3588_v44 }
 0x30c   : > { %v1134_v6 = vpack.c.bf16 %v1109_v40, %v1107_v29  ;;  %v2609_v40 = vld [vmem:[%s3317_s11 + $0x18] sm:$0xff]  }
 0x30d   : > { %v2732_v7 = vpop.eup %2731 }
 0x30e   : > { %2353 = vmatprep.mubr.bf16.mxu0 %v1134_v6  ;;  %v1113_v46 = vmul.f32 %v2732_v7, %v3592_v55  ;;  %v2734_v51 = vpop.eup %2733 }
 0x30f   : > { %v1115_v14 = vmul.f32 %v2734_v51, %v3594_v48  ;;  %v2598_v48 = vld [vmem:[%s3319_s10 + $0x30] sm:$0xff]  }
 0x310   : > { %v1135_v10 = vpack.c.bf16 %v1113_v46, %v1111_v5  ;;  %2363 = vmatprep.subr.bf16.mxu1 %v2598_v48  ;;  %v2610_v46 = vld [vmem:[%s3317_s11 + $0x10] sm:$0xff]  }
 0x311   : > { %v2736_v13 = vpop.eup %2735  ;;  %2364 = vmatpush3.bf16.msra.mxu1 %v2598_v48 }
 0x312   : > { %2354 = vmatmul.mubr.bf16.gmra.mxu0 %v1135_v10  ;;  %v1117_v54 = vmul.f32 %v2736_v13, %v3598_v59  ;;  %v2738_v41 = vpop.eup %2737  ;;  %v2599_v59 = vld [vmem:[%s3319_s10 + $0x28] sm:$0xff]  }
 0x313   : > { %v1119_v44 = vmul.f32 %v2738_v41, %v3600_v8  ;;  %2365 = vmatprep.subr.bf16.mxu1 %v2599_v59  ;;  %v2601_v8 = vld [vmem:[%s3319_s10 + $0x18] sm:$0xff]   ;;  %v2611_v13 = vld [vmem:[%s3317_s11 + $0x8] sm:$0xff]  }
 0x314   : > { %v1136_v11 = vpack.c.bf16 %v1117_v54, %v1115_v14 }
 0x315   : > { %v2740_v12 = vpop.eup %2739  ;;  %2366 = vmatpush3.bf16.msra.mxu1 %v2599_v59 }
 0x316   : > { %2357 = vmatprep.mubr.bf16.mxu0 %v1136_v11  ;;  %v1121_v55 = vmul.f32 %v2740_v12, %v3604_v9  ;;  %2367 = vmatprep.subr.bf16.mxu1 %v2600_v28  ;;  %v2602_v9 = vld [vmem:[%s3319_s10 + $0x10] sm:$0xff]   ;;  %v2612_v11 = vld [vmem:[%s3317_s11] sm:$0xff]  }
 0x318   : > { %v1137_v58 = vpack.c.bf16 %v1121_v55, %v1119_v44 }
 0x319   : > { %2368 = vmatpush3.bf16.msra.mxu1 %v2600_v28 }
 0x31a   : > { %2358 = vmatmul.mubr.bf16.gmra.mxu0 %v1137_v58  ;;  %2369 = vmatprep.subr.bf16.mxu1 %v2601_v8 }
 0x31d   : > { %2370 = vmatpush3.bf16.msra.mxu1 %v2601_v8 }
 0x31e   : > { %2371 = vmatprep.subr.bf16.mxu1 %v2602_v9 }
 0x321   : > { %2372 = vmatpush3.bf16.msra.mxu1 %v2602_v9 }
 0x322   : > { %2373 = vmatprep.subr.bf16.mxu1 %v2603_v25 }
 0x325   : > { %2374 = vmatpush3.bf16.msra.mxu1 %v2603_v25 }
 0x326   : > { %2375 = vmatprep.subr.bf16.mxu1 %v2604_v26 }
 0x329   : > { %2376 = vmatpush3.bf16.msra.mxu1 %v2604_v26 }
 0x32a   : > { %2393 = vmatprep.subr.bf16.mxu1 %v2605_v17 }
 0x3a2   : > { %v3648_v27 = vpop.f32.mrf.mxu0 }
 0x3a4   : > { %v3650_v19 = vpop.f32.mrf.mxu0 }
 0x3a6   : > { %v3652_v33 = vpop.f32.mrf.mxu0 }
 0x3a7   : > { %v1308_v39 = vpack.c.bf16 %v3652_v33, %v3648_v27 }
 0x3a8   : > { %v3656_v20 = vpop.f32.mrf.mxu0 }
 0x3a9   : > { %v1307_v12 = vpack.c.bf16 %v3656_v20, %v3650_v19 }
 0x3aa   : > { %v3658_v22 = vpop.f32.mrf.mxu0 }
 0x3ac   : > { %v3660_v62 = vpop.f32.mrf.mxu0 }
 0x3ae   : > { %v3662_v23 = vpop.f32.mrf.mxu0 }
 0x3af   : > { %v1310_v30 = vpack.c.bf16 %v3662_v23, %v3658_v22 }
 0x3b0   : > { %v3666_v43 = vpop.f32.mrf.mxu0 }
 0x3b1   : > { %v1309_v44 = vpack.c.bf16 %v3666_v43, %v3660_v62 }
 0x3b2   : > { %v3668_v47 = vpop.f32.mrf.mxu0 }
 0x3b4   : > { %v3670_v34 = vpop.f32.mrf.mxu0 }
 0x3b6   : > { %v3672_v24 = vpop.f32.mrf.mxu0 }
 0x3b7   : > { %v1312_v31 = vpack.c.bf16 %v3672_v24, %v3668_v47 }
 0x3b8   : > { %v3676_v49 = vpop.f32.mrf.mxu0 }
 0x3b9   : > { %v1311_v55 = vpack.c.bf16 %v3676_v49, %v3670_v34 }
 0x3ba   : > { %v3678_v32 = vpop.f32.mrf.mxu0 }
 0x3bc   : > { %v3680_v0 = vpop.f32.mrf.mxu0 }
 0x3be   : > { %v3682_v2 = vpop.f32.mrf.mxu0 }
 0x3bf   : > { %v1314_v37 = vpack.c.bf16 %v3682_v2, %v3678_v32 }
 0x3c0   : > { %v3686_v45 = vpop.f32.mrf.mxu0 }
 0x3c1   : > { %v1313_v58 = vpack.c.bf16 %v3686_v45, %v3680_v0 }
 0x3c2   : > { %v2347_v3 = vpop.f32.mrf.mxu0 }
 0x3c4   : > { %v1244_v4 = vpop.f32.mrf.mxu0 }
 0x3c6   : > { %v2348_v38 = vpop.f32.mrf.mxu0 }
 0x3c7   : > { %v1332_v50 = vpack.c.bf16 %v2348_v38, %v2347_v3 }
 0x3c8   : > { %v1247_v57 = vpop.f32.mrf.mxu0 }
 0x3c9   : > { %v1331_v16 = vpack.c.bf16 %v1247_v57, %v1244_v4 }
 0x3ca   : > { %v2351_v35 = vpop.f32.mrf.mxu0 }
 0x3cb   : > { %2377 = vmatprep.mubr.bf16.mxu1 %v1331_v16 }
 0x3cc   : > { %v1260_v42 = vpop.f32.mrf.mxu0  ;;  %2378 = vmatmul.mubr.bf16.vlgmr.msra.gmra.mxu1 %v1332_v50 }
 0x3cd   : > { %2394 = vmatpush3.bf16.msra.mxu1 %v2605_v17 }
 0x3ce   : > { %v2352_v60 = vpop.f32.mrf.mxu0  ;;  %2395 = vmatprep.subr.bf16.mxu1 %v2606_v36 }
 0x3cf   : > { %v1334_v56 = vpack.c.bf16 %v2352_v60, %v2351_v35 }
 0x3d0   : > { %v1263_v63 = vpop.f32.mrf.mxu0 }
 0x3d1   : > { %v1333_v61 = vpack.c.bf16 %v1263_v63, %v1260_v42  ;;  %2396 = vmatpush3.bf16.msra.mxu1 %v2606_v36 }
 0x3d2   : > { %v2355_v18 = vpop.f32.mrf.mxu0  ;;  %2397 = vmatprep.subr.bf16.mxu1 %v2607_v21 }
 0x3d3   : > { %2381 = vmatprep.mubr.bf16.mxu1 %v1333_v61 }
 0x3d4   : > { %v1276_v52 = vpop.f32.mrf.mxu0  ;;  %2382 = vmatmul.mubr.bf16.gmra.mxu1 %v1334_v56 }
 0x3d5   : > { %2398 = vmatpush3.bf16.msra.mxu1 %v2607_v21 }
 0x3d6   : > { %v2356_v29 = vpop.f32.mrf.mxu0  ;;  %2399 = vmatprep.subr.bf16.mxu1 %v2608_v1 }
 0x3d7   : > { %v1336_v7 = vpack.c.bf16 %v2356_v29, %v2355_v18 }
 0x3d8   : > { %v1279_v53 = vpop.f32.mrf.mxu0 }
 0x3d9   : > { %v1335_v6 = vpack.c.bf16 %v1279_v53, %v1276_v52  ;;  %2400 = vmatpush3.bf16.msra.mxu1 %v2608_v1 }
 0x3da   : > { %v2359_v5 = vpop.f32.mrf.mxu0  ;;  %2401 = vmatprep.subr.bf16.mxu1 %v2609_v40 }
 0x3db   : > { %2385 = vmatprep.mubr.bf16.mxu1 %v1335_v6 }
 0x3dc   : > { %v1292_v51 = vpop.f32.mrf.mxu0  ;;  %2386 = vmatmul.mubr.bf16.gmra.mxu1 %v1336_v7 }
 0x3dd   : > { %2402 = vmatpush3.bf16.msra.mxu1 %v2609_v40 }
 0x3de   : > { %v2360_v10 = vpop.f32.mrf.mxu0  ;;  %2403 = vmatprep.subr.bf16.mxu1 %v2610_v46 }
 0x3df   : > { %v1338_v41 = vpack.c.bf16 %v2360_v10, %v2359_v5 }
 0x3e0   : > { %v1295_v14 = vpop.f32.mrf.mxu0 }
 0x3e1   : > { %v1337_v54 = vpack.c.bf16 %v1295_v14, %v1292_v51  ;;  %2404 = vmatpush3.bf16.msra.mxu1 %v2610_v46 }
 0x3e2   : > { %2405 = vmatprep.subr.bf16.mxu1 %v2611_v13 }
 0x3e3   : > { %2389 = vmatprep.mubr.bf16.mxu1 %v1337_v54 }
 0x3e4   : > { %2390 = vmatmul.mubr.bf16.gmra.mxu1 %v1338_v41 }
 0x3e5   : > { %2406 = vmatpush3.bf16.msra.mxu1 %v2611_v13  ;;  %2409 = vmatprep.mubr.bf16.mxu1 %v1307_v12 }
 0x3e6   : > { %2407 = vmatprep.subr.bf16.mxu1 %v2612_v11 }
 0x3e9   : > { %2408 = vmatpush3.bf16.msra.mxu1 %v2612_v11 }
 0x3ec   : > { %2410 = vmatmul.mubr.bf16.vlgmr.msra.gmra.mxu1 %v1308_v39 }
 0x3ed   : > { %2413 = vmatprep.mubr.bf16.mxu1 %v1309_v44 }
 0x3f4   : > { %2414 = vmatmul.mubr.bf16.gmra.mxu1 %v1310_v30 }
 0x3f5   : > { %2417 = vmatprep.mubr.bf16.mxu1 %v1311_v55 }
 0x3fc   : > { %2418 = vmatmul.mubr.bf16.gmra.mxu1 %v1312_v31 }
 0x3fd   : > { %2421 = vmatprep.mubr.bf16.mxu1 %v1313_v58 }
 0x404   : > { %2422 = vmatmul.mubr.bf16.gmra.mxu1 %v1314_v37 }
 0x48c   : > { %v2379_v15 = vpop.f32.mrf.mxu1 }
 0x48e   : > { %v1437_v48 = vpop.f32.mrf.mxu1 }
 0x490   : > { %v2380_v59 = vpop.f32.mrf.mxu1 }
 0x492   : > { %v1440_v28 = vpop.f32.mrf.mxu1 }
 0x494   : > { %v2383_v8 = vpop.f32.mrf.mxu1 }
 0x496   : > { %v1453_v9 = vpop.f32.mrf.mxu1 }
 0x498   : > { %v2384_v25 = vpop.f32.mrf.mxu1 }
 0x49a   : > { %v1456_v26 = vpop.f32.mrf.mxu1 }
 0x49c   : > { %v2387_v17 = vpop.f32.mrf.mxu1 }
 0x49e   : > { %v1469_v27 = vpop.f32.mrf.mxu1 }
 0x4a0   : > { %v2388_v19 = vpop.f32.mrf.mxu1 }
 0x4a2   : > { %v1472_v33 = vpop.f32.mrf.mxu1 }
 0x4a4   : > { %v2391_v39 = vpop.f32.mrf.mxu1 }
 0x4a6   : > { %v1485_v20 = vpop.f32.mrf.mxu1 }
 0x4a8   : > { %v2392_v22 = vpop.f32.mrf.mxu1 }
 0x4aa   : > { %v1488_v62 = vpop.f32.mrf.mxu1 }
 0x4ac   : > { %v2411_v23 = vpop.f32.mrf.mxu1 }
 0x4ad   : > { %v1591_v30 = vadd.f32 %v2411_v23, %v2379_v15 }
 0x4ae   : > { %v1582_v43 = vpop.f32.mrf.mxu1 }
 0x4af   : > { %v3715_v47 = vmax.f32 %v1591_v30, 0.0  ;;  %v1583_v34 = vadd.f32 %v1582_v43, %v1437_v48 }
 0x4b0   : > { %v2412_v24 = vpop.f32.mrf.mxu1 }
 0x4b1   : > { %1663 = vst [vmem:[#allocation2 + $0x58] sm:$0xff] %v3715_v47  ;;  %v3718_v31 = vmax.f32 %v1583_v34, 0.0  ;;  %v1594_v49 = vadd.f32 %v2412_v24, %v2380_v59 }
 0x4b2   : > { %v1585_v32 = vpop.f32.mrf.mxu1 }
 0x4b3   : > { %1661 = vst [vmem:[#allocation2 + $0x30] sm:$0xff] %v3718_v31  ;;  %v3721_v0 = vmax.f32 %v1594_v49, 0.0  ;;  %v1586_v2 = vadd.f32 %v1585_v32, %v1440_v28 }
 0x4b4   : > { %v2415_v37 = vpop.f32.mrf.mxu1 }
 0x4b5   : > { %1664 = vst [vmem:[#allocation2 + $0x18] sm:$0xff] %v3721_v0  ;;  %v3724_v45 = vmax.f32 %v1586_v2, 0.0  ;;  %v1607_v3 = vadd.f32 %v2415_v37, %v2383_v8 }
 0x4b6   : > { %v1598_v4 = vpop.f32.mrf.mxu1 }
 0x4b7   : > { %1662 = vst [vmem:[#allocation2] sm:$0xff] %v3724_v45  ;;  %v3727_v38 = vmax.f32 %v1607_v3, 0.0  ;;  %v1599_v57 = vadd.f32 %v1598_v4, %v1453_v9 }
 0x4b8   : > { %v2416_v16 = vpop.f32.mrf.mxu1 }
 0x4b9   : > { %1667 = vst [vmem:[#allocation2 + $0x8] sm:$0xff] %v3727_v38  ;;  %v3730_v50 = vmax.f32 %v1599_v57, 0.0  ;;  %v1610_v35 = vadd.f32 %v2416_v16, %v2384_v25 }
 0x4ba   : > { %v1601_v36 = vpop.f32.mrf.mxu1 }
 0x4bb   : > { %1665 = vst [vmem:[#allocation2 + $0x50] sm:$0xff] %v3730_v50  ;;  %v3733_v42 = vmax.f32 %v1610_v35, 0.0  ;;  %v1602_v60 = vadd.f32 %v1601_v36, %v1456_v26 }
 0x4bc   : > { %v2419_v21 = vpop.f32.mrf.mxu1 }
 0x4bd   : > { %1668 = vst [vmem:[#allocation2 + $0x48] sm:$0xff] %v3733_v42  ;;  %v3736_v63 = vmax.f32 %v1602_v60, 0.0  ;;  %v1623_v61 = vadd.f32 %v2419_v21, %v2387_v17 }
 0x4be   : > { %v1614_v56 = vpop.f32.mrf.mxu1 }
 0x4bf   : > { %1666 = vst [vmem:[#allocation2 + $0x68] sm:$0xff] %v3736_v63  ;;  %v3739_v18 = vmax.f32 %v1623_v61, 0.0  ;;  %v1615_v1 = vadd.f32 %v1614_v56, %v1469_v27 }
 0x4c0   : > { %v2420_v52 = vpop.f32.mrf.mxu1 }
 0x4c1   : > { %1671 = vst [vmem:[#allocation2 + $0x10] sm:$0xff] %v3739_v18  ;;  %v1653_v29 = vmax.f32 %v1615_v1, 0.0  ;;  %v1626_v40 = vadd.f32 %v2420_v52, %v2388_v19 }
 0x4c2   : > { %v1617_v53 = vpop.f32.mrf.mxu1 }
 0x4c3   : > { %1669 = vst [vmem:[#allocation2 + $0x40] sm:$0xff] %v1653_v29  ;;  %v3742_v6 = vmax.f32 %v1626_v40, 0.0  ;;  %v1618_v7 = vadd.f32 %v1617_v53, %v1472_v33 }
 0x4c4   : > { %v2423_v5 = vpop.f32.mrf.mxu1 }
 0x4c5   : > { %1672 = vst [vmem:[#allocation2 + $0x38] sm:$0xff] %v3742_v6  ;;  %v1654_v46 = vmax.f32 %v1618_v7, 0.0  ;;  %v1639_v51 = vadd.f32 %v2423_v5, %v2391_v39 }
 0x4c6   : > { %v1630_v10 = vpop.f32.mrf.mxu1 }
 0x4c7   : > { %1670 = vst [vmem:[#allocation2 + $0x20] sm:$0xff] %v1654_v46  ;;  %v3745_v13 = vmax.f32 %v1639_v51, 0.0  ;;  %v1631_v14 = vadd.f32 %v1630_v10, %v1485_v20 }
 0x4c8   : > { %v2424_v54 = vpop.f32.mrf.mxu1 }
 0x4c9   : > { %1675 = vst [vmem:[#allocation2 + $0x78] sm:$0xff] %v3745_v13  ;;  %v3748_v41 = vmax.f32 %v1631_v14, 0.0  ;;  %v1642_v11 = vadd.f32 %v2424_v54, %v2392_v22 }
 0x4ca   : > { %v1633_v12 = vpop.f32.mrf.mxu1 }
 0x4cb   : > { %1673 = vst [vmem:[#allocation2 + $0x60] sm:$0xff] %v3748_v41  ;;  %v3751_v44 = vmax.f32 %v1642_v11, 0.0  ;;  %v1634_v55 = vadd.f32 %v1633_v12, %v1488_v62  ;;  %1680 = sbr.rel (%p2095_p6) target bundleno = 1475 (0x5c3), region = 88 }
 0x4cd   : > { %1676 = vst [vmem:[#allocation2 + $0x28] sm:$0xff] %v3751_v44  ;;  %v3754_v58 = vmax.f32 %v1634_v55, 0.0 }
 0x4cf   : > { %1674 = vst [vmem:[#allocation2 + $0x70] sm:$0xff] %v3754_v58 }
 0x4d0   : > { %1681 = vst [vmem:[#allocation15] sm:$0xff] %v3718_v31  ;;  %1682 = vst [vmem:[#allocation15 + $0x8] sm:$0xff] %v3724_v45  ;;  %v2741_v15 = vld [vmem:[#allocation8 + $0x38] sm:$0xff]   ;;  %v2742_v48 = vld [vmem:[#allocation8 + $0x30] sm:$0xff]   ;;  %v1697_v59 = vpack.c.bf16 %v3724_v45, %v3718_v31  ;;  %v1701_v28 = vpack.c.bf16 %v1654_v46, %v1653_v29  ;;  %v1698_v19 = vpack.c.bf16 %v3721_v0, %v3715_v47 }
 0x4d1   : > { %1683 = vst [vmem:[#allocation15 + $0x10] sm:$0xff] %v3715_v47  ;;  %1684 = vst [vmem:[#allocation15 + $0x18] sm:$0xff] %v3721_v0  ;;  %2425 = vmatprep.subr.bf16.mxu0 %v2741_v15  ;;  %2473 = vmatprep.subr.bf16.mxu1 %v2741_v15  ;;  %v2743_v8 = vld [vmem:[#allocation8 + $0x28] sm:$0xff]   ;;  %v2744_v9 = vld [vmem:[#allocation8 + $0x20] sm:$0xff]   ;;  %v1702_v33 = vpack.c.bf16 %v3742_v6, %v3739_v18  ;;  %v1699_v39 = vpack.c.bf16 %v3736_v63, %v3730_v50 }
 0x4d2   : > { %1685 = vst [vmem:[#allocation15 + $0x20] sm:$0xff] %v3730_v50  ;;  %1686 = vst [vmem:[#allocation15 + $0x28] sm:$0xff] %v3736_v63  ;;  %2426 = vmatpush3.bf16.msra.mxu0 %v2741_v15  ;;  %2481 = vmatpush3.bf16.msra.mxu1 %v2741_v15  ;;  %v2745_v25 = vld [vmem:[#allocation8 + $0x18] sm:$0xff]   ;;  %v2746_v26 = vld [vmem:[#allocation8 + $0x10] sm:$0xff]   ;;  %v1703_v20 = vpack.c.bf16 %v3754_v58, %v3748_v41  ;;  %v1700_v22 = vpack.c.bf16 %v3733_v42, %v3727_v38 }
 0x4d3   : > { %1687 = vst [vmem:[#allocation15 + $0x30] sm:$0xff] %v3727_v38  ;;  %1688 = vst [vmem:[#allocation15 + $0x38] sm:$0xff] %v3733_v42  ;;  %2427 = vmatprep.subr.bf16.mxu0 %v2742_v48  ;;  %2474 = vmatprep.subr.bf16.mxu1 %v2742_v48  ;;  %v2747_v17 = vld [vmem:[#allocation8 + $0x8] sm:$0xff]   ;;  %v2748_v27 = vld [vmem:[#allocation8] sm:$0xff]   ;;  %v1704_v62 = vpack.c.bf16 %v3751_v44, %v3745_v13 }
 0x4d4   : > { %1689 = vst [vmem:[#allocation15 + $0x40] sm:$0xff] %v1653_v29  ;;  %1690 = vst [vmem:[#allocation15 + $0x48] sm:$0xff] %v1654_v46  ;;  %2441 = vmatprep.mubr.bf16.mxu0 %v1697_v59  ;;  %2449 = vmatprep.mubr.bf16.mxu1 %v1701_v28  ;;  %v2096_v23 = vld [vmem:[%s3830_s5] ss:$0 sm:$0xff] }
 0x4d5   : > { %1691 = vst [vmem:[#allocation15 + $0x50] sm:$0xff] %v3739_v18  ;;  %1692 = vst [vmem:[#allocation15 + $0x58] sm:$0xff] %v3742_v6 }
 0x4d6   : > { %1693 = vst [vmem:[#allocation15 + $0x60] sm:$0xff] %v3748_v41  ;;  %1694 = vst [vmem:[#allocation15 + $0x68] sm:$0xff] %v3754_v58  ;;  %2428 = vmatpush3.bf16.msra.mxu0 %v2742_v48  ;;  %2482 = vmatpush3.bf16.msra.mxu1 %v2742_v48 }
 0x4d7   : > { %1695 = vst [vmem:[#allocation15 + $0x70] sm:$0xff] %v3745_v13  ;;  %1696 = vst [vmem:[#allocation15 + $0x78] sm:$0xff] %v3751_v44  ;;  %2429 = vmatprep.subr.bf16.mxu0 %v2743_v8  ;;  %2475 = vmatprep.subr.bf16.mxu1 %v2743_v8 }
 0x4da   : > { %2430 = vmatpush3.bf16.msra.mxu0 %v2743_v8  ;;  %2483 = vmatpush3.bf16.msra.mxu1 %v2743_v8 }
 0x4db   : > { %2431 = vmatprep.subr.bf16.mxu0 %v2744_v9  ;;  %2476 = vmatprep.subr.bf16.mxu1 %v2744_v9 }
 0x4de   : > { %2432 = vmatpush3.bf16.msra.mxu0 %v2744_v9  ;;  %2484 = vmatpush3.bf16.msra.mxu1 %v2744_v9 }
 0x4df   : > { %2433 = vmatprep.subr.bf16.mxu0 %v2745_v25  ;;  %2477 = vmatprep.subr.bf16.mxu1 %v2745_v25 }
 0x4e2   : > { %2434 = vmatpush3.bf16.msra.mxu0 %v2745_v25  ;;  %2485 = vmatpush3.bf16.msra.mxu1 %v2745_v25 }
 0x4e3   : > { %2435 = vmatprep.subr.bf16.mxu0 %v2746_v26  ;;  %2478 = vmatprep.subr.bf16.mxu1 %v2746_v26 }
 0x4e6   : > { %2436 = vmatpush3.bf16.msra.mxu0 %v2746_v26  ;;  %2486 = vmatpush3.bf16.msra.mxu1 %v2746_v26 }
 0x4e7   : > { %2437 = vmatprep.subr.bf16.mxu0 %v2747_v17  ;;  %2479 = vmatprep.subr.bf16.mxu1 %v2747_v17 }
 0x4ea   : > { %2438 = vmatpush3.bf16.msra.mxu0 %v2747_v17  ;;  %2487 = vmatpush3.bf16.msra.mxu1 %v2747_v17 }
 0x4eb   : > { %2439 = vmatprep.subr.bf16.mxu0 %v2748_v27  ;;  %2480 = vmatprep.subr.bf16.mxu1 %v2748_v27 }
 0x4ee   : > { %2440 = vmatpush3.bf16.msra.mxu0 %v2748_v27  ;;  %2488 = vmatpush3.bf16.msra.mxu1 %v2748_v27 }
 0x4f1   : > { %2442 = vmatmul.mubr.bf16.vlgmr.msra.gmra.mxu0 %v1698_v19  ;;  %2450 = vmatmul.mubr.bf16.vlgmr.msra.gmra.mxu1 %v1702_v33 }
 0x4f2   : > { %2445 = vmatprep.mubr.bf16.mxu0 %v1699_v39  ;;  %2453 = vmatprep.mubr.bf16.mxu1 %v1703_v20 }
 0x4f9   : > { %2446 = vmatmul.mubr.bf16.gmra.mxu0 %v1700_v22  ;;  %2454 = vmatmul.mubr.bf16.gmra.mxu1 %v1704_v62 }
 0x5b1   : > { %v2443_v30 = vpop.f32.mrf.mxu0  ;;  %v2451_v43 = vpop.f32.mrf.mxu1 }
 0x5b2   : > { %v1819_v47 = vadd.f32 %v2443_v30, %v2096_v23  ;;  %v1851_v34 = vadd.f32 %v2451_v43, %v2096_v23 }
 0x5b3   : > { %v1810_v24 = vpop.f32.mrf.mxu0  ;;  %v1842_v31 = vpop.f32.mrf.mxu1 }
 0x5b4   : > { %1875 = vst [vmem:[#allocation14 + $0x10] sm:$0xff] %v1819_v47  ;;  %1883 = vst [vmem:[#allocation14 + $0x50] sm:$0xff] %v1851_v34  ;;  %v1811_v49 = vadd.f32 %v2096_v23, %v1810_v24  ;;  %v1843_v32 = vadd.f32 %v2096_v23, %v1842_v31 }
 0x5b5   : > { %v2444_v0 = vpop.f32.mrf.mxu0  ;;  %v2452_v2 = vpop.f32.mrf.mxu1 }
 0x5b6   : > { %1873 = vst [vmem:[#allocation14] sm:$0xff] %v1811_v49  ;;  %1881 = vst [vmem:[#allocation14 + $0x40] sm:$0xff] %v1843_v32  ;;  %v1822_v37 = vadd.f32 %v2444_v0, %v2096_v23  ;;  %v1854_v45 = vadd.f32 %v2452_v2, %v2096_v23 }
 0x5b7   : > { %v1813_v3 = vpop.f32.mrf.mxu0  ;;  %v1845_v4 = vpop.f32.mrf.mxu1 }
 0x5b8   : > { %1876 = vst [vmem:[#allocation14 + $0x18] sm:$0xff] %v1822_v37  ;;  %1884 = vst [vmem:[#allocation14 + $0x58] sm:$0xff] %v1854_v45  ;;  %v1814_v38 = vadd.f32 %v2096_v23, %v1813_v3  ;;  %v1846_v57 = vadd.f32 %v2096_v23, %v1845_v4 }
 0x5b9   : > { %v2447_v16 = vpop.f32.mrf.mxu0  ;;  %v2455_v50 = vpop.f32.mrf.mxu1 }
 0x5ba   : > { %1874 = vst [vmem:[#allocation14 + $0x8] sm:$0xff] %v1814_v38  ;;  %1882 = vst [vmem:[#allocation14 + $0x48] sm:$0xff] %v1846_v57  ;;  %v1835_v35 = vadd.f32 %v2447_v16, %v2096_v23  ;;  %v1867_v36 = vadd.f32 %v2455_v50, %v2096_v23 }
 0x5bb   : > { %v1826_v42 = vpop.f32.mrf.mxu0  ;;  %v1858_v60 = vpop.f32.mrf.mxu1 }
 0x5bc   : > { %1879 = vst [vmem:[#allocation14 + $0x30] sm:$0xff] %v1835_v35  ;;  %1887 = vst [vmem:[#allocation14 + $0x70] sm:$0xff] %v1867_v36  ;;  %v1827_v21 = vadd.f32 %v2096_v23, %v1826_v42  ;;  %v1859_v63 = vadd.f32 %v2096_v23, %v1858_v60 }
 0x5bd   : > { %v2448_v61 = vpop.f32.mrf.mxu0  ;;  %v2456_v56 = vpop.f32.mrf.mxu1 }
 0x5be   : > { %1877 = vst [vmem:[#allocation14 + $0x20] sm:$0xff] %v1827_v21  ;;  %1885 = vst [vmem:[#allocation14 + $0x60] sm:$0xff] %v1859_v63  ;;  %v1838_v18 = vadd.f32 %v2448_v61, %v2096_v23  ;;  %v1870_v1 = vadd.f32 %v2456_v56, %v2096_v23 }
 0x5bf   : > { %v1829_v52 = vpop.f32.mrf.mxu0  ;;  %v1861_v29 = vpop.f32.mrf.mxu1 }
 0x5c0   : > { %1880 = vst [vmem:[#allocation14 + $0x38] sm:$0xff] %v1838_v18  ;;  %1888 = vst [vmem:[#allocation14 + $0x78] sm:$0xff] %v1870_v1  ;;  %v1830_v40 = vadd.f32 %v2096_v23, %v1829_v52  ;;  %v1862_v53 = vadd.f32 %v2096_v23, %v1861_v29 }
 0x5c2   : > { %1878 = vst [vmem:[#allocation14 + $0x28] sm:$0xff] %v1830_v40  ;;  %1886 = vst [vmem:[#allocation14 + $0x68] sm:$0xff] %v1862_v53 }
 0x5c3 PF: > { %p2542_p8 = scmp.eq.s32.totalorder %s3103_s17, 1  ;;  %s3025_s22 = smov [#allocation14]  }
 0x5c4   : > { %s1895_s29 = sshll.u32 %s3025_s22, 4  ;;  %s1896_s29 = int_to_ptr.vmem [resolvable:$true] %s1895_s29 }
 0x5c5   : > { %s2911_s28 = scalar_lea.vmem %s1896_s29, 2048  ;;  %p2918_p7 = scmp.lt.s32.totalorder %s1896_s29, %s1896_s29 }
 0x5c6   : > { %p2912_p10 = scmp.ne.s32.totalorder %s1896_s29, %s2911_s28  ;;  %p2919_p13 = scmp.lt.s32.totalorder %s2911_s28, %s2911_s28 }
 0x5c8   : > { %p2913_p12 = pnand %p2912_p10, %p2542_p8  ;;  %p2920_p2 = por %p2919_p13, %p2918_p7 }
 0x5ca   : > { %p2914_p0 = pneg %p2913_p12 }
 0x5cc   : > { %p2921_p11 = pnand %p2920_p2, %p2914_p0 }
 0x5ce   : > { %2924 = shalt.err (!%p2921_p11)
}
 0x5cf   : > { %s3026_s13 = smov 128   ;;  %s3027_s25 = smov 8  }
 0x5d0   : > { %s3876_s19 = sld [smem:[#allocation26_spill]]  ;;  %s3028_s24 = smov [#allocation15]  }
 0x5d1   : > { %s1908_s18 = sshll.u32 %s3028_s24, 4  ;;  %s1909_s18 = int_to_ptr.vmem [resolvable:$true] %s1908_s18 }
 0x5d2   : > { %s2935_s12 = scalar_lea.vmem %s1909_s18, 2048  ;;  %p2942_p9 = scmp.lt.s32.totalorder %s1909_s18, %s1909_s18 }
 0x5d3   : > { %p2936_p1 = scmp.ne.s32.totalorder %s1909_s18, %s2935_s12  ;;  %p2943_p3 = scmp.lt.s32.totalorder %s2935_s12, %s2935_s12 }
 0x5d5   : > { %p2937_p4 = pnand %p2936_p1, %p2542_p8  ;;  %p2944_p6 = por %p2943_p3, %p2942_p9 }
 0x5d6   : > { %2508 = dma.vmem_to_hbm [thread:$0]  (%p2542_p8), %s1896_s29, 2048, %s3876_s19, [#allocation5], %s3026_s13, %s3026_s13, %s3027_s25  }
 0x5d7   : > { %p2938_p5 = pneg %p2937_p4 }
 0x5d9   : > { %p2945_p10 = pnand %p2944_p6, %p2938_p5 }
 0x5db   : > { %2948 = shalt.err (!%p2945_p10)
}
 0x5dc   : > { %s3877_s10 = sld [smem:[#allocation27_spill]] }
 0x5e2   : > { %2510 = dma.vmem_to_hbm [thread:$0]  (%p2542_p8), %s1909_s18, 2048, %s3877_s10, [#allocation16], %s3026_s13, %s3026_s13, %s3027_s25  }
 0x5e3   : > { %2992 = dma.done.wait (%p2542_p8), [#allocation5], 2048  }
 0x5e4   : > { %2994 = vsyncadd (%p2542_p8), [#allocation5], 4294965248 }
 0x5e5   : > { %2996 = dma.done.wait (%p2542_p8), [#allocation16], 2048  }
 0x5e6   : > { %2998 = vsyncadd (%p2542_p8), [#allocation16], 4294965248 }
 0x5e7 PF: > { %s3878_s16 = sld [smem:[#allocation24_spill]]  ;;  %s3881_s13 = smov %s3005_s14 }
 0x5e8   : > { %s3879_s23 = sld [smem:[#allocation23_spill]] }
 0x5e9   : > { %s3880_s15 = sld [smem:[#allocation25_spill]] }
 0x5ed   : > { %p28_p12 = scmp.ge.s32.totalorder %s3878_s16, 4  }
 0x5ee   : > { %s3882_s14 = smov %s3879_s23 }
 0x5ef   :  { %30 = sbr.rel (!%p28_p12) target bundleno = 12 (0xc), region = 146 }
 0x5f4   :  { %1928 = vsyncpa [#allocation4], 1 }
 0x5f5   :  { %1930 = vsyncpa [#allocation4 + $0x1], 1 }
 0x5f6   :  { %1931 = vsyncpa [#allocation7], 1 }
 0x5f7   :  { %1932 = vsyncpa [#allocation10], 1 }
 0x5f8   :  { %1934 = vsyncpa [#allocation10 + $0x1], 1 }
 0x5f9   :  { %1935 = vsyncpa [#allocation13], 1 }
 0x5fa   :  { %1937 = vsyncpa [#allocation13 + $0x1], 1 }
 0x5fb   :  { %1938 = vsyncpa [#allocation5], 1 }
 0x5fc   :  { %1940 = vsyncpa [#allocation5 + $0x1], 1 }
 0x5fd   :  { %1941 = vsyncpa [#allocation16], 1 }

</bundles_post_ra>
